<compile_context>
chip_gen: v7x
topology: tpu7x:2x2x1
jax: 0.10.0
libtpu: 0.0.40
codegen_flags: <defaults>
</compile_context>

<pallas_src>
import math
from typing import List, NamedTuple, Tuple, Union

import jax
import jax.numpy as jnp
from jax.experimental import pallas as pl
from jax.experimental.pallas import tpu as pltpu


class _LayerGeom(NamedTuple):
    Cin: int
    Cout: int
    H: int    # layer input height
    W: int    # layer input width
    KH: int
    KW: int
    sh: int
    sw: int
    ph: int
    pw: int
    Hp: int   # padded height
    Wp: int   # padded width
    OH: int
    OW: int
    L: int    # wide (row-pitch Wp) length covered by the single MXU dot


def _layer_geom(Cin, Cout, H, W, KH, KW, sh, sw, ph, pw) -> _LayerGeom:
    Hp, Wp = H + 2 * ph, W + 2 * pw
    OH = (Hp - KH) // sh + 1
    OW = (Wp - KW) // sw + 1
    # Wide layout: column m' of the patch matrix corresponds to window origin
    # (m' // Wp, m' % Wp) in the padded image.  We only need m' up to the last strided output.
    L = (OH - 1) * sh * Wp + (OW - 1) * sw + 1
    return _LayerGeom(Cin, Cout, H, W, KH, KW, sh, sw, ph, pw, Hp, Wp, OH, OW, L)


def _build_encoder_kernel(geoms, Nb, compute_dtype):
    """Fused Conv2d+BN(eval)+ReLU stack; refs = (x, [w,b,sel]*L, out, pad_scratch*L)."""
    nl = len(geoms)

    def kernel(*refs):
        x_ref = refs[0]
        layer_refs = refs[1:1 + 3 * nl]
        o_ref = refs[1 + 3 * nl]
        pad_refs = refs[2 + 3 * nl:]

        # Zero the flat padded-activation scratches once per grid step.  Interiors are fully
        # overwritten per image below; the untouched border supplies the conv zero-padding.
        for pr in pad_refs:
            pr[...] = jnp.zeros(pr.shape, pr.dtype)

        for n in range(Nb):                                   # unrolled at trace time (Nb tiny)
            act = x_ref[n].astype(compute_dtype)              # (Cin0, H0*W0), spatial on lanes
            for li, g in enumerate(geoms):
                w_ref, b_ref, s_ref = layer_refs[3 * li:3 * li + 3]
                pad_ref = pad_refs[li]

                # 1) In-VMEM padding: scatter activation rows into the interior of the
                #    zero-padded flat (Cin, Hp*Wp) scratch.  Dense static slices only.
                for r in range(g.H):
                    dst = (r + g.ph) * g.Wp + g.pw
                    pad_ref[:, dst:dst + g.W] = act[:, r * g.W:(r + 1) * g.W]
                xpad = pad_ref[...]                           # (Cin, Hp*Wp)

                # 2) Tap gather: KH*KW dense lane-offset slices of the flat padded image,
                #    stacked on the contraction axis -> (KH*KW*Cin, L).  No strided slices,
                #    no value reshapes.
                taps = []
                for kh in range(g.KH):
                    for kw in range(g.KW):
                        s0 = kh * g.Wp + kw
                        taps.append(xpad[:, s0:s0 + g.L])
                patches = jnp.concatenate(taps, axis=0)       # (K, L)

                # 3) Single MXU dot per layer, spatial (M) axis on lanes, f32 accumulation.
                acc_wide = jnp.dot(w_ref[...], patches,
                                   preferred_element_type=jnp.float32)    # (Cout, L)

                # 4) Compaction matmul: drops the wide layout's inter-row wrap columns and
                #    applies the conv stride with one dense 0/1 f32 dot (robust on all
                #    generations; MXU cost is negligible at these sizes).
                acc = jnp.dot(acc_wide, s_ref[...],
                              preferred_element_type=jnp.float32)         # (Cout, OH*OW)

                # 5) Folded-BN bias + ReLU epilogue in f32.
                y = jnp.maximum(acc + b_ref[...], 0.0)

                if li + 1 < nl:
                    act = y.astype(compute_dtype)             # chain to next layer in VMEM
                else:
                    o_ref[n] = y.astype(o_ref.dtype)          # lane-dense (Cout, OH*OW) store

    return kernel


def encoder_forward_pallas(x_nchw, params, geoms, *, eps=1e-5, compute_dtype=jnp.bfloat16):
    """Fused forward pass of the whole encoder in one pallas_call.  Output is NCHW f32."""
    N = x_nchw.shape[0]
    g0, gl = geoms[0], geoms[-1]

    # >=2 grid steps keeps both v7x TensorCores busy; on v5e/v6e the extra step is negligible.
    num_steps = 2 if (N >= 2 and N % 2 == 0) else 1
    Nb = N // num_steps

    # Only HBM read: the flat NCHW view of the input (free reshape, no pad, no transpose).
    operands = [x_nchw.reshape(N, g0.Cin, g0.H * g0.W)]
    in_specs = [pl.BlockSpec((Nb, g0.Cin, g0.H * g0.W), lambda i: (i, 0, 0))]

    for p, g in zip(params, geoms):
        # Fold eval-mode BN into the conv: scale into the weight rows, bias kept in f32.
        scale = p["gamma"] * jax.lax.rsqrt(p["rvar"] + eps)                     # (Cout,)
        w_fold = p["w"] * scale[:, None, None, None]                            # (Cout,Cin,KH,KW)
        w_fold = jnp.transpose(w_fold, (0, 2, 3, 1)).reshape(
            g.Cout, g.KH * g.KW * g.Cin).astype(compute_dtype)                  # (Cout, K)
        b_fold = ((p["b"] - p["rmean"]) * scale + p["beta"]).reshape(
            g.Cout, 1).astype(jnp.float32)                                      # (Cout, 1)

        # 0/1 compaction matrix: wide column (q//OW)*sh*Wp + (q%OW)*sw -> compact column q.
        q = jnp.arange(g.OH * g.OW)
        src = (q // g.OW) * g.sh * g.Wp + (q % g.OW) * g.sw
        sel = (jnp.arange(g.L)[:, None] == src[None, :]).astype(jnp.float32)    # (L, OH*OW)

        operands += [w_fold, b_fold, sel]
        in_specs += [
            pl.BlockSpec((g.Cout, g.KH * g.KW * g.Cin), lambda i: (0, 0)),
            pl.BlockSpec((g.Cout, 1), lambda i: (0, 0)),
            pl.BlockSpec((g.L, g.OH * g.OW), lambda i: (0, 0)),
        ]

    out_shape = jax.ShapeDtypeStruct((N, gl.Cout, gl.OH * gl.OW), jnp.float32)
    out_specs = pl.BlockSpec((Nb, gl.Cout, gl.OH * gl.OW), lambda i: (i, 0, 0))
    scratch_shapes = [pltpu.VMEM((g.Cin, g.Hp * g.Wp), compute_dtype) for g in geoms]

    kernel = _build_encoder_kernel(geoms, Nb, compute_dtype)
    out_flat = pl.pallas_call(
        kernel,
        out_shape=out_shape,
        grid=(num_steps,),
        in_specs=in_specs,
        out_specs=out_specs,
        scratch_shapes=scratch_shapes,
        compiler_params=pltpu.CompilerParams(
            dimension_semantics=("parallel",),
            vmem_limit_bytes=32 * 1024 * 1024,   # tiny footprint; safe on v5e/v6e/v7x
        ),
    )(*operands)
    # NCHW, f32 — matches the PyTorch module's output layout/dtype (free trailing-dim reshape).
    return out_flat.reshape(N, gl.Cout, gl.OH, gl.OW)


def _to_tuple(p: Union[int, Tuple[int, int]]) -> Tuple[int, int]:
    return (p, p) if isinstance(p, int) else p


class EncoderPallas:
    """JAX/Pallas port of the PyTorch Encoder (Conv2d + BatchNorm2d + ReLU stack)."""

    def __init__(self, inputShape: Tuple[int, int, int],
                 convChannels: List[int],
                 convKernels: List[Union[int, Tuple[int, int]]],
                 convStrides: List[Union[int, Tuple[int, int]]],
                 convPadding: List[Union[int, Tuple[int, int]]],
                 key):
        self.numConvLayers = len(convChannels) - 1
        self.params = []
        self.geoms: List[_LayerGeom] = []
        self.output_paddings = []
        currentShape = inputShape
        for i in range(self.numConvLayers):
            kernel = _to_tuple(convKernels[i])
            stride = _to_tuple(convStrides[i])
            padding = _to_tuple(convPadding[i])
            cin, cout = convChannels[i], convChannels[i + 1]

            key, k_w, k_b, k_g, k_be, k_m, k_v = jax.random.split(key, 7)
            fan_in = cin * kernel[0] * kernel[1]
            wstd = 1.0 / math.sqrt(fan_in)
            p = dict(
                w=jax.random.normal(k_w, (cout, cin, kernel[0], kernel[1]), jnp.float32) * wstd,
                b=jax.random.normal(k_b, (cout,), jnp.float32) * 0.01,
                gamma=1.0 + 0.1 * jax.random.normal(k_g, (cout,), jnp.float32),
                beta=0.1 * jax.random.normal(k_be, (cout,), jnp.float32),
                rmean=0.1 * jax.random.normal(k_m, (cout,), jnp.float32),
                rvar=jax.random.uniform(k_v, (cout,), jnp.float32, 0.5, 1.5),
            )
            self.params.append(p)

            g = _layer_geom(cin, cout, currentShape[1], currentShape[2],
                            kernel[0], kernel[1], stride[0], stride[1],
                            padding[0], padding[1])
            self.geoms.append(g)

            opad_v = currentShape[1] - stride[0] * (g.OH - 1) + 2 * padding[0] - kernel[0]
            opad_h = currentShape[2] - stride[1] * (g.OW - 1) + 2 * padding[1] - kernel[1]
            self.output_paddings.append((opad_v, opad_h))
            currentShape = (cout, g.OH, g.OW)
        self.postConvShape = currentShape

    def __call__(self, x_nchw, compute_dtype=jnp.bfloat16):
        return encoder_forward_pallas(x_nchw, self.params, self.geoms,
                                      compute_dtype=compute_dtype)


def _reference_forward(enc: EncoderPallas, x_nchw, eps=1e-5):
    """Plain-JAX (XLA conv, f32-accurate) reference, eval-mode BN."""
    x = x_nchw
    for p, g in zip(enc.params, enc.geoms):
        y = jax.lax.conv_general_dilated(
            x, p["w"], window_strides=(g.sh, g.sw),
            padding=[(g.ph, g.ph), (g.pw, g.pw)],
            dimension_numbers=("NCHW", "OIHW", "NCHW"),
            precision=jax.lax.Precision.HIGHEST)
        y = y + p["b"][None, :, None, None]
        s = (p["gamma"] * jax.lax.rsqrt(p["rvar"] + eps))[None, :, None, None]
        y = (y - p["rmean"][None, :, None, None]) * s + p["beta"][None, :, None, None]
        x = jnp.maximum(y, 0.0)
    return x


if __name__ == "__main__":
    key = jax.random.PRNGKey(0)
    k_param, k_x = jax.random.split(key)

    # Small config consistent with the module: inputShape=(C,H,W)=(4,16,16), 2 conv layers.
    inputShape = (4, 16, 16)
    convChannels = [4, 8, 16]
    convKernels = [3, 3]
    convStrides = [1, 2]
    convPadding = [1, 1]
    batch = 2

    enc = EncoderPallas(inputShape, convChannels, convKernels, convStrides, convPadding, k_param)

    x = jax.random.normal(k_x, (batch,) + inputShape, jnp.float32)  # NCHW, like PyTorch

    ref = jax.block_until_ready(_reference_forward(enc, x))

    # 1) Exact-semantics f32 path: must match the f32 XLA reference tightly.
    out_f32 = jax.block_until_ready(enc(x, compute_dtype=jnp.float32))
    assert out_f32.shape == (batch,) + enc.postConvShape, (out_f32.shape, enc.postConvShape)
    err_f32 = float(jnp.max(jnp.abs(out_f32 - ref)))
    assert err_f32 < 1e-3, err_f32

    # 2) Optimized default path: bf16-fed MXU, f32 accumulate/epilogue.  Tolerance covers
    #    bf16 input/weight rounding compounding across two layers (inference-grade accuracy).
    out_bf16 = jax.block_until_ready(enc(x))
    assert out_bf16.shape == (batch,) + enc.postConvShape, (out_bf16.shape, enc.postConvShape)
    err_bf16 = float(jnp.max(jnp.abs(out_bf16 - ref)))
    assert err_bf16 < 1.5e-1, err_bf16

    print("KERNEL_OK")
</pallas_src>

<mosaic_0001>
module attributes {stable_mosaic.version = 11 : i64} {
  func.func @kernel(%arg0: i32, %arg1: memref<1x4x256xf32, #tpu.memory_space<vmem>>, %arg2: memref<8x36xf32, #tpu.memory_space<vmem>>, %arg3: memref<8x1xf32, #tpu.memory_space<vmem>>, %arg4: memref<286x256xf32, #tpu.memory_space<vmem>>, %arg5: memref<16x72xf32, #tpu.memory_space<vmem>>, %arg6: memref<16x1xf32, #tpu.memory_space<vmem>>, %arg7: memref<267x64xf32, #tpu.memory_space<vmem>>, %arg8: memref<1x16x64xf32, #tpu.memory_space<vmem>>, %arg9: memref<4x324xf32, #tpu.memory_space<vmem>>, %arg10: memref<8x324xf32, #tpu.memory_space<vmem>>) attributes {dimension_semantics = [#tpu.dimension_semantics<parallel>], iteration_bounds = array<i64: 2>, scalar_prefetch = 0 : i64, scratch_operands = 2 : i64, tpu.core_type = #tpu.core_type<tc>, window_params = [{transform_indices = @transform_0, window_bounds = array<i64: 1, 4, 256>}, {pipeline_mode = #tpu.pipeline_mode<synchronous>, transform_indices = @transform_1, window_bounds = array<i64: 8, 36>}, {pipeline_mode = #tpu.pipeline_mode<synchronous>, transform_indices = @transform_2, window_bounds = array<i64: 8, 1>}, {pipeline_mode = #tpu.pipeline_mode<synchronous>, transform_indices = @transform_3, window_bounds = array<i64: 286, 256>}, {pipeline_mode = #tpu.pipeline_mode<synchronous>, transform_indices = @transform_4, window_bounds = array<i64: 16, 72>}, {pipeline_mode = #tpu.pipeline_mode<synchronous>, transform_indices = @transform_5, window_bounds = array<i64: 16, 1>}, {pipeline_mode = #tpu.pipeline_mode<synchronous>, transform_indices = @transform_6, window_bounds = array<i64: 267, 64>}, {transform_indices = @transform_7, window_bounds = array<i64: 1, 16, 64>}]} {
    %cst = arith.constant 0.000000e+00 : f32
    %0 = vector.broadcast %cst : f32 to vector<4x324xf32>
    %c0 = arith.constant 0 : index
    %c0_0 = arith.constant 0 : index
    %1 = vector.load %arg9[%c0, %c0_0] : memref<4x324xf32, #tpu.memory_space<vmem>>, vector<4x324xf32>
    tpu.vector_store %arg9[%c0, %c0_0], %0 {strides = array<i32>} : memref<4x324xf32, #tpu.memory_space<vmem>>, vector<4x324xf32>,
    %cst_1 = arith.constant 0.000000e+00 : f32
    %2 = vector.broadcast %cst_1 : f32 to vector<8x324xf32>
    %c0_2 = arith.constant 0 : index
    %c0_3 = arith.constant 0 : index
    %3 = vector.load %arg10[%c0_2, %c0_3] : memref<8x324xf32, #tpu.memory_space<vmem>>, vector<8x324xf32>
    tpu.vector_store %arg10[%c0_2, %c0_3], %2 {strides = array<i32>} : memref<8x324xf32, #tpu.memory_space<vmem>>, vector<8x324xf32>,
    %c0_4 = arith.constant 0 : index
    %c0_5 = arith.constant 0 : index
    %c0_6 = arith.constant 0 : index
    %4 = vector.load %arg1[%c0_4, %c0_5, %c0_6] : memref<1x4x256xf32, #tpu.memory_space<vmem>>, vector<1x4x256xf32>
    %5 = vector.shape_cast %4 : vector<1x4x256xf32> to vector<4x256xf32>
    %6 = vector.extract_strided_slice %5 {offsets = [0, 0], sizes = [4, 16], strides = [1, 1]} : vector<4x256xf32> to vector<4x16xf32>
    %c0_7 = arith.constant 0 : index
    %c19 = arith.constant 19 : index
    %7 = vector.load %arg9[%c0_7, %c19] : memref<4x324xf32, #tpu.memory_space<vmem>>, vector<4x16xf32>
    tpu.vector_store %arg9[%c0_7, %c19], %6 {strides = array<i32>} : memref<4x324xf32, #tpu.memory_space<vmem>>, vector<4x16xf32>,
    %8 = vector.extract_strided_slice %5 {offsets = [0, 16], sizes = [4, 16], strides = [1, 1]} : vector<4x256xf32> to vector<4x16xf32>
    %c0_8 = arith.constant 0 : index
    %c37 = arith.constant 37 : index
    %9 = vector.load %arg9[%c0_8, %c37] : memref<4x324xf32, #tpu.memory_space<vmem>>, vector<4x16xf32>
    tpu.vector_store %arg9[%c0_8, %c37], %8 {strides = array<i32>} : memref<4x324xf32, #tpu.memory_space<vmem>>, vector<4x16xf32>,
    %10 = vector.extract_strided_slice %5 {offsets = [0, 32], sizes = [4, 16], strides = [1, 1]} : vector<4x256xf32> to vector<4x16xf32>
    %c0_9 = arith.constant 0 : index
    %c55 = arith.constant 55 : index
    %11 = vector.load %arg9[%c0_9, %c55] : memref<4x324xf32, #tpu.memory_space<vmem>>, vector<4x16xf32>
    tpu.vector_store %arg9[%c0_9, %c55], %10 {strides = array<i32>} : memref<4x324xf32, #tpu.memory_space<vmem>>, vector<4x16xf32>,
    %12 = vector.extract_strided_slice %5 {offsets = [0, 48], sizes = [4, 16], strides = [1, 1]} : vector<4x256xf32> to vector<4x16xf32>
    %c0_10 = arith.constant 0 : index
    %c73 = arith.constant 73 : index
    %13 = vector.load %arg9[%c0_10, %c73] : memref<4x324xf32, #tpu.memory_space<vmem>>, vector<4x16xf32>
    tpu.vector_store %arg9[%c0_10, %c73], %12 {strides = array<i32>} : memref<4x324xf32, #tpu.memory_space<vmem>>, vector<4x16xf32>,
    %14 = vector.extract_strided_slice %5 {offsets = [0, 64], sizes = [4, 16], strides = [1, 1]} : vector<4x256xf32> to vector<4x16xf32>
    %c0_11 = arith.constant 0 : index
    %c91 = arith.constant 91 : index
    %15 = vector.load %arg9[%c0_11, %c91] : memref<4x324xf32, #tpu.memory_space<vmem>>, vector<4x16xf32>
    tpu.vector_store %arg9[%c0_11, %c91], %14 {strides = array<i32>} : memref<4x324xf32, #tpu.memory_space<vmem>>, vector<4x16xf32>,
    %16 = vector.extract_strided_slice %5 {offsets = [0, 80], sizes = [4, 16], strides = [1, 1]} : vector<4x256xf32> to vector<4x16xf32>
    %c0_12 = arith.constant 0 : index
    %c109 = arith.constant 109 : index
    %17 = vector.load %arg9[%c0_12, %c109] : memref<4x324xf32, #tpu.memory_space<vmem>>, vector<4x16xf32>
    tpu.vector_store %arg9[%c0_12, %c109], %16 {strides = array<i32>} : memref<4x324xf32, #tpu.memory_space<vmem>>, vector<4x16xf32>,
    %18 = vector.extract_strided_slice %5 {offsets = [0, 96], sizes = [4, 16], strides = [1, 1]} : vector<4x256xf32> to vector<4x16xf32>
    %c0_13 = arith.constant 0 : index
    %c127 = arith.constant 127 : index
    %19 = vector.load %arg9[%c0_13, %c127] : memref<4x324xf32, #tpu.memory_space<vmem>>, vector<4x16xf32>
    tpu.vector_store %arg9[%c0_13, %c127], %18 {strides = array<i32>} : memref<4x324xf32, #tpu.memory_space<vmem>>, vector<4x16xf32>,
    %20 = vector.extract_strided_slice %5 {offsets = [0, 112], sizes = [4, 16], strides = [1, 1]} : vector<4x256xf32> to vector<4x16xf32>
    %c0_14 = arith.constant 0 : index
    %c145 = arith.constant 145 : index
    %21 = vector.load %arg9[%c0_14, %c145] : memref<4x324xf32, #tpu.memory_space<vmem>>, vector<4x16xf32>
    tpu.vector_store %arg9[%c0_14, %c145], %20 {strides = array<i32>} : memref<4x324xf32, #tpu.memory_space<vmem>>, vector<4x16xf32>,
    %22 = vector.extract_strided_slice %5 {offsets = [0, 128], sizes = [4, 16], strides = [1, 1]} : vector<4x256xf32> to vector<4x16xf32>
    %c0_15 = arith.constant 0 : index
    %c163 = arith.constant 163 : index
    %23 = vector.load %arg9[%c0_15, %c163] : memref<4x324xf32, #tpu.memory_space<vmem>>, vector<4x16xf32>
    tpu.vector_store %arg9[%c0_15, %c163], %22 {strides = array<i32>} : memref<4x324xf32, #tpu.memory_space<vmem>>, vector<4x16xf32>,
    %24 = vector.extract_strided_slice %5 {offsets = [0, 144], sizes = [4, 16], strides = [1, 1]} : vector<4x256xf32> to vector<4x16xf32>
    %c0_16 = arith.constant 0 : index
    %c181 = arith.constant 181 : index
    %25 = vector.load %arg9[%c0_16, %c181] : memref<4x324xf32, #tpu.memory_space<vmem>>, vector<4x16xf32>
    tpu.vector_store %arg9[%c0_16, %c181], %24 {strides = array<i32>} : memref<4x324xf32, #tpu.memory_space<vmem>>, vector<4x16xf32>,
    %26 = vector.extract_strided_slice %5 {offsets = [0, 160], sizes = [4, 16], strides = [1, 1]} : vector<4x256xf32> to vector<4x16xf32>
    %c0_17 = arith.constant 0 : index
    %c199 = arith.constant 199 : index
    %27 = vector.load %arg9[%c0_17, %c199] : memref<4x324xf32, #tpu.memory_space<vmem>>, vector<4x16xf32>
    tpu.vector_store %arg9[%c0_17, %c199], %26 {strides = array<i32>} : memref<4x324xf32, #tpu.memory_space<vmem>>, vector<4x16xf32>,
    %28 = vector.extract_strided_slice %5 {offsets = [0, 176], sizes = [4, 16], strides = [1, 1]} : vector<4x256xf32> to vector<4x16xf32>
    %c0_18 = arith.constant 0 : index
    %c217 = arith.constant 217 : index
    %29 = vector.load %arg9[%c0_18, %c217] : memref<4x324xf32, #tpu.memory_space<vmem>>, vector<4x16xf32>
    tpu.vector_store %arg9[%c0_18, %c217], %28 {strides = array<i32>} : memref<4x324xf32, #tpu.memory_space<vmem>>, vector<4x16xf32>,
    %30 = vector.extract_strided_slice %5 {offsets = [0, 192], sizes = [4, 16], strides = [1, 1]} : vector<4x256xf32> to vector<4x16xf32>
    %c0_19 = arith.constant 0 : index
    %c235 = arith.constant 235 : index
    %31 = vector.load %arg9[%c0_19, %c235] : memref<4x324xf32, #tpu.memory_space<vmem>>, vector<4x16xf32>
    tpu.vector_store %arg9[%c0_19, %c235], %30 {strides = array<i32>} : memref<4x324xf32, #tpu.memory_space<vmem>>, vector<4x16xf32>,
    %32 = vector.extract_strided_slice %5 {offsets = [0, 208], sizes = [4, 16], strides = [1, 1]} : vector<4x256xf32> to vector<4x16xf32>
    %c0_20 = arith.constant 0 : index
    %c253 = arith.constant 253 : index
    %33 = vector.load %arg9[%c0_20, %c253] : memref<4x324xf32, #tpu.memory_space<vmem>>, vector<4x16xf32>
    tpu.vector_store %arg9[%c0_20, %c253], %32 {strides = array<i32>} : memref<4x324xf32, #tpu.memory_space<vmem>>, vector<4x16xf32>,
    %34 = vector.extract_strided_slice %5 {offsets = [0, 224], sizes = [4, 16], strides = [1, 1]} : vector<4x256xf32> to vector<4x16xf32>
    %c0_21 = arith.constant 0 : index
    %c271 = arith.constant 271 : index
    %35 = vector.load %arg9[%c0_21, %c271] : memref<4x324xf32, #tpu.memory_space<vmem>>, vector<4x16xf32>
    tpu.vector_store %arg9[%c0_21, %c271], %34 {strides = array<i32>} : memref<4x324xf32, #tpu.memory_space<vmem>>, vector<4x16xf32>,
    %36 = vector.extract_strided_slice %5 {offsets = [0, 240], sizes = [4, 16], strides = [1, 1]} : vector<4x256xf32> to vector<4x16xf32>
    %c0_22 = arith.constant 0 : index
    %c289 = arith.constant 289 : index
    %37 = vector.load %arg9[%c0_22, %c289] : memref<4x324xf32, #tpu.memory_space<vmem>>, vector<4x16xf32>
    tpu.vector_store %arg9[%c0_22, %c289], %36 {strides = array<i32>} : memref<4x324xf32, #tpu.memory_space<vmem>>, vector<4x16xf32>,
    %c0_23 = arith.constant 0 : index
    %c0_24 = arith.constant 0 : index
    %38 = vector.load %arg9[%c0_23, %c0_24] : memref<4x324xf32, #tpu.memory_space<vmem>>, vector<4x324xf32>
    %39 = vector.extract_strided_slice %38 {offsets = [0, 0], sizes = [4, 286], strides = [1, 1]} : vector<4x324xf32> to vector<4x286xf32>
    %40 = vector.extract_strided_slice %38 {offsets = [0, 1], sizes = [4, 286], strides = [1, 1]} : vector<4x324xf32> to vector<4x286xf32>
    %41 = vector.extract_strided_slice %38 {offsets = [0, 2], sizes = [4, 286], strides = [1, 1]} : vector<4x324xf32> to vector<4x286xf32>
    %42 = vector.extract_strided_slice %38 {offsets = [0, 18], sizes = [4, 286], strides = [1, 1]} : vector<4x324xf32> to vector<4x286xf32>
    %43 = vector.extract_strided_slice %38 {offsets = [0, 19], sizes = [4, 286], strides = [1, 1]} : vector<4x324xf32> to vector<4x286xf32>
    %44 = vector.extract_strided_slice %38 {offsets = [0, 20], sizes = [4, 286], strides = [1, 1]} : vector<4x324xf32> to vector<4x286xf32>
    %45 = vector.extract_strided_slice %38 {offsets = [0, 36], sizes = [4, 286], strides = [1, 1]} : vector<4x324xf32> to vector<4x286xf32>
    %46 = vector.extract_strided_slice %38 {offsets = [0, 37], sizes = [4, 286], strides = [1, 1]} : vector<4x324xf32> to vector<4x286xf32>
    %47 = vector.extract_strided_slice %38 {offsets = [0, 38], sizes = [4, 286], strides = [1, 1]} : vector<4x324xf32> to vector<4x286xf32>
    %48 = tpu.concatenate %39, %40, %41, %42, %43, %44, %45, %46, %47 in 0 : vector<4x286xf32>, vector<4x286xf32>, vector<4x286xf32>, vector<4x286xf32>, vector<4x286xf32>, vector<4x286xf32>, vector<4x286xf32>, vector<4x286xf32>, vector<4x286xf32> -> vector<36x286xf32>
    %c0_25 = arith.constant 0 : index
    %c0_26 = arith.constant 0 : index
    %49 = vector.load %arg2[%c0_25, %c0_26] : memref<8x36xf32, #tpu.memory_space<vmem>>, vector<8x36xf32>
    %cst_27 = arith.constant dense<0.000000e+00> : vector<8x286xf32>
    %50 = tpu.matmul %49, %48, %cst_27 {dimension_numbers = #tpu.dot_dimension_numbers<[1], [0], [0], [1], [0, 0, 1, 1], [], []>} : vector<8x36xf32>, vector<36x286xf32>, vector<8x286xf32> -> vector<8x286xf32>
    %c0_28 = arith.constant 0 : index
    %c0_29 = arith.constant 0 : index
    %51 = vector.load %arg4[%c0_28, %c0_29] : memref<286x256xf32, #tpu.memory_space<vmem>>, vector<286x256xf32>
    %cst_30 = arith.constant dense<0.000000e+00> : vector<8x256xf32>
    %52 = tpu.matmul %50, %51, %cst_30 {dimension_numbers = #tpu.dot_dimension_numbers<[1], [0], [0], [1], [0, 0, 1, 1], [], []>} : vector<8x286xf32>, vector<286x256xf32>, vector<8x256xf32> -> vector<8x256xf32>
    %c0_31 = arith.constant 0 : index
    %c0_32 = arith.constant 0 : index
    %53 = vector.load %arg3[%c0_31, %c0_32] : memref<8x1xf32, #tpu.memory_space<vmem>>, vector<8x1xf32>
    %54 = vector.broadcast %53 : vector<8x1xf32> to vector<8x256xf32>
    %55 = arith.addf %52, %54 : vector<8x256xf32>
    %cst_33 = arith.constant 0.000000e+00 : f32
    %56 = vector.broadcast %cst_33 : f32 to vector<8x256xf32>
    %57 = arith.maximumf %55, %56 : vector<8x256xf32>
    %58 = vector.extract_strided_slice %57 {offsets = [0, 0], sizes = [8, 16], strides = [1, 1]} : vector<8x256xf32> to vector<8x16xf32>
    %c0_34 = arith.constant 0 : index
    %c19_35 = arith.constant 19 : index
    %59 = vector.load %arg10[%c0_34, %c19_35] : memref<8x324xf32, #tpu.memory_space<vmem>>, vector<8x16xf32>
    tpu.vector_store %arg10[%c0_34, %c19_35], %58 {strides = array<i32>} : memref<8x324xf32, #tpu.memory_space<vmem>>, vector<8x16xf32>,
    %60 = vector.extract_strided_slice %57 {offsets = [0, 16], sizes = [8, 16], strides = [1, 1]} : vector<8x256xf32> to vector<8x16xf32>
    %c0_36 = arith.constant 0 : index
    %c37_37 = arith.constant 37 : index
    %61 = vector.load %arg10[%c0_36, %c37_37] : memref<8x324xf32, #tpu.memory_space<vmem>>, vector<8x16xf32>
    tpu.vector_store %arg10[%c0_36, %c37_37], %60 {strides = array<i32>} : memref<8x324xf32, #tpu.memory_space<vmem>>, vector<8x16xf32>,
    %62 = vector.extract_strided_slice %57 {offsets = [0, 32], sizes = [8, 16], strides = [1, 1]} : vector<8x256xf32> to vector<8x16xf32>
    %c0_38 = arith.constant 0 : index
    %c55_39 = arith.constant 55 : index
    %63 = vector.load %arg10[%c0_38, %c55_39] : memref<8x324xf32, #tpu.memory_space<vmem>>, vector<8x16xf32>
    tpu.vector_store %arg10[%c0_38, %c55_39], %62 {strides = array<i32>} : memref<8x324xf32, #tpu.memory_space<vmem>>, vector<8x16xf32>,
    %64 = vector.extract_strided_slice %57 {offsets = [0, 48], sizes = [8, 16], strides = [1, 1]} : vector<8x256xf32> to vector<8x16xf32>
    %c0_40 = arith.constant 0 : index
    %c73_41 = arith.constant 73 : index
    %65 = vector.load %arg10[%c0_40, %c73_41] : memref<8x324xf32, #tpu.memory_space<vmem>>, vector<8x16xf32>
    tpu.vector_store %arg10[%c0_40, %c73_41], %64 {strides = array<i32>} : memref<8x324xf32, #tpu.memory_space<vmem>>, vector<8x16xf32>,
    %66 = vector.extract_strided_slice %57 {offsets = [0, 64], sizes = [8, 16], strides = [1, 1]} : vector<8x256xf32> to vector<8x16xf32>
    %c0_42 = arith.constant 0 : index
    %c91_43 = arith.constant 91 : index
    %67 = vector.load %arg10[%c0_42, %c91_43] : memref<8x324xf32, #tpu.memory_space<vmem>>, vector<8x16xf32>
    tpu.vector_store %arg10[%c0_42, %c91_43], %66 {strides = array<i32>} : memref<8x324xf32, #tpu.memory_space<vmem>>, vector<8x16xf32>,
    %68 = vector.extract_strided_slice %57 {offsets = [0, 80], sizes = [8, 16], strides = [1, 1]} : vector<8x256xf32> to vector<8x16xf32>
    %c0_44 = arith.constant 0 : index
    %c109_45 = arith.constant 109 : index
    %69 = vector.load %arg10[%c0_44, %c109_45] : memref<8x324xf32, #tpu.memory_space<vmem>>, vector<8x16xf32>
    tpu.vector_store %arg10[%c0_44, %c109_45], %68 {strides = array<i32>} : memref<8x324xf32, #tpu.memory_space<vmem>>, vector<8x16xf32>,
    %70 = vector.extract_strided_slice %57 {offsets = [0, 96], sizes = [8, 16], strides = [1, 1]} : vector<8x256xf32> to vector<8x16xf32>
    %c0_46 = arith.constant 0 : index
    %c127_47 = arith.constant 127 : index
    %71 = vector.load %arg10[%c0_46, %c127_47] : memref<8x324xf32, #tpu.memory_space<vmem>>, vector<8x16xf32>
    tpu.vector_store %arg10[%c0_46, %c127_47], %70 {strides = array<i32>} : memref<8x324xf32, #tpu.memory_space<vmem>>, vector<8x16xf32>,
    %72 = vector.extract_strided_slice %57 {offsets = [0, 112], sizes = [8, 16], strides = [1, 1]} : vector<8x256xf32> to vector<8x16xf32>
    %c0_48 = arith.constant 0 : index
    %c145_49 = arith.constant 145 : index
    %73 = vector.load %arg10[%c0_48, %c145_49] : memref<8x324xf32, #tpu.memory_space<vmem>>, vector<8x16xf32>
    tpu.vector_store %arg10[%c0_48, %c145_49], %72 {strides = array<i32>} : memref<8x324xf32, #tpu.memory_space<vmem>>, vector<8x16xf32>,
    %74 = vector.extract_strided_slice %57 {offsets = [0, 128], sizes = [8, 16], strides = [1, 1]} : vector<8x256xf32> to vector<8x16xf32>
    %c0_50 = arith.constant 0 : index
    %c163_51 = arith.constant 163 : index
    %75 = vector.load %arg10[%c0_50, %c163_51] : memref<8x324xf32, #tpu.memory_space<vmem>>, vector<8x16xf32>
    tpu.vector_store %arg10[%c0_50, %c163_51], %74 {strides = array<i32>} : memref<8x324xf32, #tpu.memory_space<vmem>>, vector<8x16xf32>,
    %76 = vector.extract_strided_slice %57 {offsets = [0, 144], sizes = [8, 16], strides = [1, 1]} : vector<8x256xf32> to vector<8x16xf32>
    %c0_52 = arith.constant 0 : index
    %c181_53 = arith.constant 181 : index
    %77 = vector.load %arg10[%c0_52, %c181_53] : memref<8x324xf32, #tpu.memory_space<vmem>>, vector<8x16xf32>
    tpu.vector_store %arg10[%c0_52, %c181_53], %76 {strides = array<i32>} : memref<8x324xf32, #tpu.memory_space<vmem>>, vector<8x16xf32>,
    %78 = vector.extract_strided_slice %57 {offsets = [0, 160], sizes = [8, 16], strides = [1, 1]} : vector<8x256xf32> to vector<8x16xf32>
    %c0_54 = arith.constant 0 : index
    %c199_55 = arith.constant 199 : index
    %79 = vector.load %arg10[%c0_54, %c199_55] : memref<8x324xf32, #tpu.memory_space<vmem>>, vector<8x16xf32>
    tpu.vector_store %arg10[%c0_54, %c199_55], %78 {strides = array<i32>} : memref<8x324xf32, #tpu.memory_space<vmem>>, vector<8x16xf32>,
    %80 = vector.extract_strided_slice %57 {offsets = [0, 176], sizes = [8, 16], strides = [1, 1]} : vector<8x256xf32> to vector<8x16xf32>
    %c0_56 = arith.constant 0 : index
    %c217_57 = arith.constant 217 : index
    %81 = vector.load %arg10[%c0_56, %c217_57] : memref<8x324xf32, #tpu.memory_space<vmem>>, vector<8x16xf32>
    tpu.vector_store %arg10[%c0_56, %c217_57], %80 {strides = array<i32>} : memref<8x324xf32, #tpu.memory_space<vmem>>, vector<8x16xf32>,
    %82 = vector.extract_strided_slice %57 {offsets = [0, 192], sizes = [8, 16], strides = [1, 1]} : vector<8x256xf32> to vector<8x16xf32>
    %c0_58 = arith.constant 0 : index
    %c235_59 = arith.constant 235 : index
    %83 = vector.load %arg10[%c0_58, %c235_59] : memref<8x324xf32, #tpu.memory_space<vmem>>, vector<8x16xf32>
    tpu.vector_store %arg10[%c0_58, %c235_59], %82 {strides = array<i32>} : memref<8x324xf32, #tpu.memory_space<vmem>>, vector<8x16xf32>,
    %84 = vector.extract_strided_slice %57 {offsets = [0, 208], sizes = [8, 16], strides = [1, 1]} : vector<8x256xf32> to vector<8x16xf32>
    %c0_60 = arith.constant 0 : index
    %c253_61 = arith.constant 253 : index
    %85 = vector.load %arg10[%c0_60, %c253_61] : memref<8x324xf32, #tpu.memory_space<vmem>>, vector<8x16xf32>
    tpu.vector_store %arg10[%c0_60, %c253_61], %84 {strides = array<i32>} : memref<8x324xf32, #tpu.memory_space<vmem>>, vector<8x16xf32>,
    %86 = vector.extract_strided_slice %57 {offsets = [0, 224], sizes = [8, 16], strides = [1, 1]} : vector<8x256xf32> to vector<8x16xf32>
    %c0_62 = arith.constant 0 : index
    %c271_63 = arith.constant 271 : index
    %87 = vector.load %arg10[%c0_62, %c271_63] : memref<8x324xf32, #tpu.memory_space<vmem>>, vector<8x16xf32>
    tpu.vector_store %arg10[%c0_62, %c271_63], %86 {strides = array<i32>} : memref<8x324xf32, #tpu.memory_space<vmem>>, vector<8x16xf32>,
    %88 = vector.extract_strided_slice %57 {offsets = [0, 240], sizes = [8, 16], strides = [1, 1]} : vector<8x256xf32> to vector<8x16xf32>
    %c0_64 = arith.constant 0 : index
    %c289_65 = arith.constant 289 : index
    %89 = vector.load %arg10[%c0_64, %c289_65] : memref<8x324xf32, #tpu.memory_space<vmem>>, vector<8x16xf32>
    tpu.vector_store %arg10[%c0_64, %c289_65], %88 {strides = array<i32>} : memref<8x324xf32, #tpu.memory_space<vmem>>, vector<8x16xf32>,
    %c0_66 = arith.constant 0 : index
    %c0_67 = arith.constant 0 : index
    %90 = vector.load %arg10[%c0_66, %c0_67] : memref<8x324xf32, #tpu.memory_space<vmem>>, vector<8x324xf32>
    %91 = vector.extract_strided_slice %90 {offsets = [0, 0], sizes = [8, 267], strides = [1, 1]} : vector<8x324xf32> to vector<8x267xf32>
    %92 = vector.extract_strided_slice %90 {offsets = [0, 1], sizes = [8, 267], strides = [1, 1]} : vector<8x324xf32> to vector<8x267xf32>
    %93 = vector.extract_strided_slice %90 {offsets = [0, 2], sizes = [8, 267], strides = [1, 1]} : vector<8x324xf32> to vector<8x267xf32>
    %94 = vector.extract_strided_slice %90 {offsets = [0, 18], sizes = [8, 267], strides = [1, 1]} : vector<8x324xf32> to vector<8x267xf32>
    %95 = vector.extract_strided_slice %90 {offsets = [0, 19], sizes = [8, 267], strides = [1, 1]} : vector<8x324xf32> to vector<8x267xf32>
    %96 = vector.extract_strided_slice %90 {offsets = [0, 20], sizes = [8, 267], strides = [1, 1]} : vector<8x324xf32> to vector<8x267xf32>
    %97 = vector.extract_strided_slice %90 {offsets = [0, 36], sizes = [8, 267], strides = [1, 1]} : vector<8x324xf32> to vector<8x267xf32>
    %98 = vector.extract_strided_slice %90 {offsets = [0, 37], sizes = [8, 267], strides = [1, 1]} : vector<8x324xf32> to vector<8x267xf32>
    %99 = vector.extract_strided_slice %90 {offsets = [0, 38], sizes = [8, 267], strides = [1, 1]} : vector<8x324xf32> to vector<8x267xf32>
    %100 = tpu.concatenate %91, %92, %93, %94, %95, %96, %97, %98, %99 in 0 : vector<8x267xf32>, vector<8x267xf32>, vector<8x267xf32>, vector<8x267xf32>, vector<8x267xf32>, vector<8x267xf32>, vector<8x267xf32>, vector<8x267xf32>, vector<8x267xf32> -> vector<72x267xf32>
    %c0_68 = arith.constant 0 : index
    %c0_69 = arith.constant 0 : index
    %101 = vector.load %arg5[%c0_68, %c0_69] : memref<16x72xf32, #tpu.memory_space<vmem>>, vector<16x72xf32>
    %cst_70 = arith.constant dense<0.000000e+00> : vector<16x267xf32>
    %102 = tpu.matmul %101, %100, %cst_70 {dimension_numbers = #tpu.dot_dimension_numbers<[1], [0], [0], [1], [0, 0, 1, 1], [], []>} : vector<16x72xf32>, vector<72x267xf32>, vector<16x267xf32> -> vector<16x267xf32>
    %c0_71 = arith.constant 0 : index
    %c0_72 = arith.constant 0 : index
    %103 = vector.load %arg7[%c0_71, %c0_72] : memref<267x64xf32, #tpu.memory_space<vmem>>, vector<267x64xf32>
    %cst_73 = arith.constant dense<0.000000e+00> : vector<16x64xf32>
    %104 = tpu.matmul %102, %103, %cst_73 {dimension_numbers = #tpu.dot_dimension_numbers<[1], [0], [0], [1], [0, 0, 1, 1], [], []>} : vector<16x267xf32>, vector<267x64xf32>, vector<16x64xf32> -> vector<16x64xf32>
    %c0_74 = arith.constant 0 : index
    %c0_75 = arith.constant 0 : index
    %105 = vector.load %arg6[%c0_74, %c0_75] : memref<16x1xf32, #tpu.memory_space<vmem>>, vector<16x1xf32>
    %106 = vector.broadcast %105 : vector<16x1xf32> to vector<16x64xf32>
    %107 = arith.addf %104, %106 : vector<16x64xf32>
    %cst_76 = arith.constant 0.000000e+00 : f32
    %108 = vector.broadcast %cst_76 : f32 to vector<16x64xf32>
    %109 = arith.maximumf %107, %108 : vector<16x64xf32>
    %c0_77 = arith.constant 0 : index
    %c0_78 = arith.constant 0 : index
    %c0_79 = arith.constant 0 : index
    %110 = vector.load %arg8[%c0_77, %c0_78, %c0_79] : memref<1x16x64xf32, #tpu.memory_space<vmem>>, vector<1x16x64xf32>
    %111 = vector.shape_cast %110 : vector<1x16x64xf32> to vector<16x64xf32>
    %112 = vector.shape_cast %109 : vector<16x64xf32> to vector<1x16x64xf32>
    tpu.vector_store %arg8[%c0_77, %c0_78, %c0_79], %112 {strides = array<i32>} : memref<1x16x64xf32, #tpu.memory_space<vmem>>, vector<1x16x64xf32>,
    return
  }
  func.func @transform_0(%arg0: i32) -> (i32, i32, i32) {
    %c0_i32 = arith.constant 0 : i32
    %c0_i32_0 = arith.constant 0 : i32
    %c0_i32_1 = arith.constant 0 : i32
    return %arg0, %c0_i32, %c0_i32_0 : i32, i32, i32
  }
  func.func @transform_1(%arg0: i32) -> (i32, i32) {
    %c0_i32 = arith.constant 0 : i32
    %c0_i32_0 = arith.constant 0 : i32
    %c0_i32_1 = arith.constant 0 : i32
    return %c0_i32, %c0_i32_0 : i32, i32
  }
  func.func @transform_2(%arg0: i32) -> (i32, i32) {
    %c0_i32 = arith.constant 0 : i32
    %c0_i32_0 = arith.constant 0 : i32
    %c0_i32_1 = arith.constant 0 : i32
    return %c0_i32, %c0_i32_0 : i32, i32
  }
  func.func @transform_3(%arg0: i32) -> (i32, i32) {
    %c0_i32 = arith.constant 0 : i32
    %c0_i32_0 = arith.constant 0 : i32
    %c0_i32_1 = arith.constant 0 : i32
    return %c0_i32, %c0_i32_0 : i32, i32
  }
  func.func @transform_4(%arg0: i32) -> (i32, i32) {
    %c0_i32 = arith.constant 0 : i32
    %c0_i32_0 = arith.constant 0 : i32
    %c0_i32_1 = arith.constant 0 : i32
    return %c0_i32, %c0_i32_0 : i32, i32
  }
  func.func @transform_5(%arg0: i32) -> (i32, i32) {
    %c0_i32 = arith.constant 0 : i32
    %c0_i32_0 = arith.constant 0 : i32
    %c0_i32_1 = arith.constant 0 : i32
    return %c0_i32, %c0_i32_0 : i32, i32
  }
  func.func @transform_6(%arg0: i32) -> (i32, i32) {
    %c0_i32 = arith.constant 0 : i32
    %c0_i32_0 = arith.constant 0 : i32
    %c0_i32_1 = arith.constant 0 : i32
    return %c0_i32, %c0_i32_0 : i32, i32
  }
  func.func @transform_7(%arg0: i32) -> (i32, i32, i32) {
    %c0_i32 = arith.constant 0 : i32
    %c0_i32_0 = arith.constant 0 : i32
    %c0_i32_1 = arith.constant 0 : i32
    return %arg0, %c0_i32, %c0_i32_0 : i32, i32, i32
  }
}

</mosaic_0001>

<bundles_post_ra>
// kernel: tpu_custom_call.1
= control target key start
LH: loop header
LB: loop body
LE: loop exit
PB: predicated region body
PF: predicated region fallthrough
CT: control target
= control target key end

     0   :  { %12 = vsyncpa [#allocation5], 0  ;;  %s2600_s0 = inlined_call_operand.vmem [shape: f32[2,4,256], index: 0, kind: input, shape index: {}]   ;;  %s2601_s1 = inlined_call_operand.vmem [shape: f32[8,36], index: 1, kind: input, shape index: {}]   ;;  %s2602_s2 = inlined_call_operand.vmem [shape: f32[8,1], index: 2, kind: input, shape index: {}]   ;;  %s2603_s3 = inlined_call_operand.hbm [shape: f32[286,256], index: 3, kind: input, shape index: {}]   ;;  %s2604_s4 = inlined_call_operand.vmem [shape: f32[16,72], index: 4, kind: input, shape index: {}]   ;;  %s2605_s5 = inlined_call_operand.vmem [shape: f32[16,1], index: 5, kind: input, shape index: {}]   ;;  %s2606_s6 = inlined_call_operand.vmem [shape: f32[267,64], index: 6, kind: input, shape index: {}]   ;;  %s2607_s7 = inlined_call_operand.hbm [shape: f32[2,16,64], index: 7, kind: output, shape index: {}]  }
   0x1   :  { %13 = vsyncpa [#allocation6], 0 }
   0x2   :  { %15 = vsyncpa [#allocation6 + $0x1], 0  ;;  %s2170_s24 = smov 0   ;;  %s2172_s25 = smov 0  }
   0x3   :  { %s2174_s26 = smov 0   ;;  %s2176_s27 = smov 0  }
   0x4 LB: > { %s2191_s28 = sadd.s32 4294967295, %s2093_s27   ;;  %s1548_s29 = sadd.s32 4294967294, %s2093_s27   ;;  %s2093_s27 = sphi %s2176_s27, %s2662_s27   ;;  %s2089_s26 = sphi %s2174_s26, %s2661_s26   ;;  %s2085_s25 = sphi %s2172_s25, %s2660_s25   ;;  %s2081_s24 = sphi %s2170_s24, %s2659_s24  }
   0x5   : > { %s2195_s30 = sadd.s32 1, %s2093_s27   ;;  %s180_s8 = sadd.s32 1, %s2089_s26 }
   0x6   : > { %s177_s9 = ssub.s32 %s2093_s27, %s2195_s30  ;;  %p190_p0 = scmp.ne.s32.totalorder %s2089_s26, %s2085_s25 }
   0x7   : > { %p178_p1 = scmp.eq.s32.totalorder %s177_s9, 0  ;;  %p191_p2 = scmp.eq.s32.totalorder %s2191_s28, 1 }
   0x8   : > { %p196_p3 = scmp.ne.s32.totalorder %s2085_s25, %s2081_s24  ;;  %p197_p4 = scmp.eq.s32.totalorder %s1548_s29, 1 }
   0x9   : > { %s2206_s10 = scalar_select %p178_p1, %s2089_s26, %s180_s8  }
   0xa   : > { %p2208_p5 = por %p191_p2, %p190_p0  ;;  %p2212_p6 = por %p197_p4, %p196_p3 }
   0xb   : > { %p1549_p7 = scmp.ge.s32.totalorder %s2093_s27, 1  ;;  %p204_p8 = scmp.lt.s32.totalorder %s2093_s27, 3 }
   0xc   : > { %s2631_s11 = scalar_select %p2208_p5, 1, 0 }
   0xd   : > { %s2632_s12 = scalar_select %p2212_p6, 1, 0 }
   0xe   : > { %p2608_p9 = scmp.eq.s32.totalorder %s2191_s28, 0  ;;  %p2219_p10 = pnand %p1549_p7, %p204_p8 }
   0xf   : > { %s2095_s14 = smov [#allocation4]   ;;  %s1999_s19 = scalar_lea.hbm %s2603_s3, 9216 }
  0x10   : > { %s2633_s13 = scalar_select %p2219_p10, 1, 0 }
  0x11   : > { %s222_s15 = sshll.u32 %s2095_s14, 4  ;;  %p1847_p11 = pneg %p2219_p10  ;;  %s223_s15 = int_to_ptr.vmem [resolvable:$true] %s222_s15 }
  0x12   : > { %p2000_p13 = scmp.ne.s32.totalorder %s2603_s3, %s1999_s19  ;;  %p2006_p3 = scmp.lt.u32.totalorder %s1999_s19, %s2603_s3 }
  0x13   : > { %p2227_p12 = pnand %p2608_p9, %p1847_p11 }
  0x15   : > { %p2001_p0 = pneg %p2227_p12 }
  0x17   : > { %p2002_p1 = pnand %p2001_p0, %p2000_p13 }
  0x19   : > { %p2003_p2 = pneg %p2002_p1 }
  0x1b   : > { %p2008_p4 = pnand %p2006_p3, %p2003_p2 }
  0x1d   : > { %2011 = shalt.err (!%p2008_p4)
}
  0x1e   : > { %s2012_s29 = scalar_lea.vmem %s223_s15, 9216  ;;  %p2020_p9 = scmp.lt.s32.totalorder %s223_s15, %s223_s15 }
  0x1f   : > { %p2013_p7 = scmp.ne.s32.totalorder %s223_s15, %s2012_s29  ;;  %p2021_p6 = scmp.lt.s32.totalorder %s2012_s29, %s2012_s29 }
  0x21   : > { %p2015_p8 = pnand %p2013_p7, %p2001_p0  ;;  %p2022_p5 = por %p2021_p6, %p2020_p9 }
  0x23   : > { %p2016_p11 = pneg %p2015_p8 }
  0x25   : > { %p2023_p10 = pnand %p2022_p5, %p2016_p11 }
  0x27   : > { %2026 = shalt.err (!%p2023_p10)
}
  0x28   : > { %s2096_s8 = smov 256   ;;  %s2097_s9 = smov 16  }
  0x29   : > { %1850 = dma.hbm_to_vmem [thread:$0]  (!%p2227_p12), %s2603_s3, 9216, %s223_s15, [#allocation5], %s2096_s8, %s2096_s8, %s2097_s9  }
  0x2a   : > { %p2635_p13 = scmp.ne.s32.totalorder %s2633_s13, 0 }
  0x2b   : > { %p2636_p1 = scmp.eq.s32.totalorder (!%p2635_p13), %s2191_s28, 0 }
  0x2c   : > { %255 = sbr.rel (%p2635_p13) target bundleno = 1568 (0x620), region = 48 }
  0x33   : > { %2072 = dma.done.wait (%p2636_p1), [#allocation5], 9216   ;;  %p2637_p0 = pmov %p2636_p1 }
  0x34   : > { %p287_p5 = scmp.lt.s32.totalorder %s2191_s28, 1  ;;  %v2098_v0 = vmov 0.0   ;;  %s2099_s20 = smov 23   ;;  %vm293_vm0 = vcmask 551936   ;;  %vm304_vm1 = vcmask 281752   ;;  %vm309_vm2 = vcmask 429352  }
  0x35   : > { %2074 = vsyncadd (%p2637_p0), [#allocation5], 4294958080  ;;  %292 = vst [vmem:[#allocation2] sm:$0xff] %v2098_v0  ;;  %597 = vmatprep.mubr.f32.mxu0 %v2098_v0  ;;  %s2100_s21 = smov 19   ;;  %s2612_s22 = smov 25   ;;  %vm314_vm3 = vcmask 576952  }
  0x36   : > { %295 = vst [vmem:[#allocation3] sm:$0xff] %v2098_v0  ;;  %296 = vst [vmem:[#allocation3 + $0x8] sm:$0xff] %v2098_v0  ;;  %s288_s13 = scalar_select %p287_p5, %s2191_s28, 1  ;;  %vm319_vm4 = vcmask 724552   ;;  %vm324_vm5 = vcmask 872152   ;;  %vm337_vm6 = vcmask 1044472  }
  0x37   : > { %s2102_s23 = smov 21   ;;  %s2103_s29 = smov 27   ;;  %294 = vst.msk [vmem:[#allocation2 + $0x8] sm:$0xf] %vm293_vm0, %v2098_v0  ;;  %vm338_vm7 = vcmask 121860   ;;  %vm334_vm8 = vcmask 252928  }
  0x38   : > { %s1577_s15 = sshll.u32 %s288_s13, 3  ;;  %s2104_s8 = smov 31   ;;  %vm329_vm9 = vcmask 1019752   ;;  %vm339_vm10 = vmor %vm338_vm7, %vm337_vm6  ;;  %vm349_vm11 = vcmask 285696   ;;  %vm344_vm12 = vcmask 265352   ;;  %vm352_vm13 = vcmask 412952  }
  0x39   : > { %s291_s19 = scalar_lea.vmem %s2600_s0, %s1577_s15  ;;  %s2105_s9 = smov 35   ;;  %vm357_vm14 = vcmask 302080   ;;  %vm360_vm15 = vcmask 560552   ;;  %vm373_vm0 = vcmask 334848   ;;  %vm389_vm6 = vcmask 367616  }
  0x3a   : > { %v299_v1 = vld [vmem:[%s291_s19] sm:$0xff]  ;;  %s2611_s14 = smov 29   ;;  %s2107_s17 = smov 33   ;;  %vm381_vm7 = vcmask 351232   ;;  %v2118_v40 = vmov 0.0|0.0  }
  0x3b   : > { %311 = vrot.lane.b32.xlu1 %v299_v1, %s2099_s20  ;;  %301 = vrot.lane.b32.xlu0 %v299_v1, %s2100_s21  ;;  %s2108_s13 = smov 37   ;;  %s2617_s15 = smov 41  }
  0x3c   : > { %s2622_s16 = smov 39   ;;  %s2616_s18 = smov 45   ;;  %1687 = vmatprep.subr.bf16.mxu1 %v2118_v40 }
  0x3d   : > { %s2614_s19 = smov 43   ;;  %p2657_p9 = scmp.ne.s32.totalorder %s2631_s11, 0 }
  0x3f   : > { %316 = vrot.lane.b32.xlu1 %v299_v1, %s2612_s22  ;;  %306 = vrot.lane.b32.xlu0 %v299_v1, %s2102_s23  ;;  %s2613_s22 = smov 49  }
  0x43   : > { %321 = vrot.lane.b32.xlu1 %v299_v1, %s2103_s29  ;;  %331 = vrot.lane.b32.xlu0 %v299_v1, %s2104_s8 }
  0x47   : > { %346 = vrot.lane.b32.xlu1 %v299_v1, %s2105_s9  ;;  %326 = vrot.lane.b32.xlu0 %v299_v1, %s2611_s14  ;;  %s2615_s14 = smov 47  }
  0x4b   : > { %341 = vrot.lane.b32.xlu1 %v299_v1, %s2107_s17  ;;  %354 = vrot.lane.b32.xlu0 %v299_v1, %s2108_s13 }
  0x4f   : > { %370 = vrot.lane.b32.xlu1 %v299_v1, %s2617_s15  ;;  %362 = vrot.lane.b32.xlu0 %v299_v1, %s2622_s16  ;;  %s2120_s15 = smov 110   ;;  %s2623_s16 = smov 90  }
  0x53   : > { %386 = vrot.lane.b32.xlu1 %v299_v1, %s2616_s18  ;;  %378 = vrot.lane.b32.xlu0 %v299_v1, %s2614_s19  ;;  %s2618_s19 = smov 109   ;;  %s2119_s18 = smov 92  }
  0x57   : > { %396 = vrot.lane.b32.xlu0 %v299_v1, %s2615_s14  ;;  %402 = vrot.lane.b32.xlu1 %v299_v1, %s2613_s22  ;;  %s2620_s22 = smov 126   ;;  %s2117_s14 = smov 127  }
  0xad   : > { %v312_v2 = vpop.permute.xlu1 %311  ;;  %v302_v3 = vpop.permute.xlu0 %301 }
  0xae   : > { %305 = vst.msk [vmem:[#allocation2] sm:$0xf] %vm304_vm1, %v302_v3  ;;  %vm365_vm1 = vcmask 318464  }
  0xb1   : > { %v317_v4 = vpop.permute.xlu1 %316  ;;  %v307_v5 = vpop.permute.xlu0 %306 }
  0xb2   : > { %310 = vst.msk [vmem:[#allocation2] sm:$0xf] %vm309_vm2, %v307_v5  ;;  %vm368_vm2 = vcmask 708152  }
  0xb3   : > { %315 = vst.msk [vmem:[#allocation2] sm:$0xf] %vm314_vm3, %v312_v2  ;;  %vm376_vm3 = vcmask 855752  }
  0xb4   : > { %320 = vst.msk [vmem:[#allocation2] sm:$0xf] %vm319_vm4, %v317_v4  ;;  %vm392_vm4 = vcmask 1044456  }
  0xb5   : > { %v322_v6 = vpop.permute.xlu1 %321  ;;  %v332_v7 = vpop.permute.xlu0 %331 }
  0xb6   : > { %325 = vst.msk [vmem:[#allocation2] sm:$0xf] %vm324_vm5, %v322_v6  ;;  %v333_v8 = vrot.slane %v332_v7, 4  ;;  %vm393_vm5 = vcmask 105476  }
  0xb8   : > { %v335_v11 = vsel %vm334_vm8, %v333_v8, %v332_v7  ;;  %vm384_vm8 = vcmask 1003352  }
  0xb9   : > { %v347_v9 = vpop.permute.xlu1 %346  ;;  %v327_v10 = vpop.permute.xlu0 %326 }
  0xba   : > { %v348_v12 = vrot.slane %v347_v9, 4  ;;  %330 = vst.msk [vmem:[#allocation2] sm:$0xf] %vm329_vm9, %v327_v10  ;;  %vm394_vm9 = vmor %vm393_vm5, %vm392_vm4  ;;  %vm2629_vm4 = vcmask 744448   ;;  %vm2628_vm5 = vcmask 736256  }
  0xbb   : > { %340 = vst.msk [vmem:[#allocation2] sm:$0xff] %vm339_vm10, %v335_v11  ;;  %vm400_vm10 = vcmask 248952  }
  0xbc   : > { %v350_v15 = vsel %vm349_vm11, %v347_v9, %v348_v12  ;;  %vm406_vm11 = vcmask 396552  }
  0xbd   : > { %v342_v13 = vpop.permute.xlu1 %341  ;;  %v355_v14 = vpop.permute.xlu0 %354 }
  0xbe   : > { %345 = vst.msk [vmem:[#allocation2 + $0x4] sm:$0xf] %vm344_vm12, %v342_v13  ;;  %v356_v16 = vrot.slane %v355_v14, 4  ;;  %vm2123_vm12 = vmmov 0  }
  0xbf   : > { %353 = vst.msk [vmem:[#allocation2 + $0x4] sm:$0xf] %vm352_vm13, %v350_v15  ;;  %1648 = vmatprep.mubr.msk.f32.mxu1 %vm2123_vm12, %v2098_v0  ;;  %vm434_vm13 = vcmask 1031168   ;;  %vm943_vm12 = vcmask 121856  }
  0xc0   : > { %v358_v17 = vsel %vm357_vm14, %v355_v14, %v356_v16  ;;  %vm422_vm14 = vcmask 1039360  }
  0xc1   : > { %361 = vst.msk [vmem:[#allocation2 + $0x4] sm:$0xf] %vm360_vm15, %v358_v17  ;;  %v371_v18 = vpop.permute.xlu1 %370  ;;  %v363_v19 = vpop.permute.xlu0 %362  ;;  %vm458_vm15 = vcmask 891904  }
  0xc2   : > { %v372_v20 = vrot.slane %v371_v18, 4  ;;  %v364_v21 = vrot.slane %v363_v19, 4 }
  0xc4   : > { %v374_v22 = vsel %vm373_vm0, %v371_v18, %v372_v20  ;;  %v366_v23 = vsel %vm365_vm1, %v363_v19, %v364_v21  ;;  %vm470_vm0 = vcmask 883712   ;;  %vm2630_vm1 = vcmask 752640  }
  0xc5   : > { %369 = vst.msk [vmem:[#allocation2 + $0x4] sm:$0xf] %vm368_vm2, %v366_v23  ;;  %v387_v24 = vpop.permute.xlu1 %386  ;;  %v379_v25 = vpop.permute.xlu0 %378  ;;  %vm509_vm2 = vcmask 1043456  }
  0xc6   : > { %v388_v26 = vrot.slane %v387_v24, 4  ;;  %377 = vst.msk [vmem:[#allocation2 + $0x4] sm:$0xf] %vm376_vm3, %v374_v22  ;;  %v380_v27 = vrot.slane %v379_v25, 4  ;;  %vm446_vm3 = vcmask 900096  }
  0xc8   : > { %v390_v28 = vsel %vm389_vm6, %v387_v24, %v388_v26  ;;  %v382_v29 = vsel %vm381_vm7, %v379_v25, %v380_v27  ;;  %vm523_vm6 = vcmask 293888   ;;  %vm756_vm7 = vcmask 1045504  }
  0xc9   : > { %385 = vst.msk [vmem:[#allocation2 + $0x4] sm:$0xf] %vm384_vm8, %v382_v29  ;;  %v397_v30 = vpop.permute.xlu0 %396  ;;  %v403_v31 = vpop.permute.xlu1 %402  ;;  %vm2627_vm8 = vmmov 1  }
  0xca   : > { %395 = vst.msk [vmem:[#allocation2 + $0x4] sm:$0xff] %vm394_vm9, %v390_v28  ;;  %v398_v32 = vrot.slane %v397_v30, 4  ;;  %v404_v33 = vrot.slane %v403_v31, 4  ;;  %vm1762_vm9 = vmpackc.low %vm756_vm7, %vm2627_vm8  ;;  %vm954_vm7 = vcmask 417048   ;;  %vm964_vm8 = vcmask 712248  }
  0xcc   : > { %401 = vst.msk [vmem:[#allocation2 + $0x8] sm:$0xf] %vm400_vm10, %v398_v32  ;;  %vm752_vm10 = vcmask 244736  }
  0xcd   : > { %407 = vst.msk [vmem:[#allocation2 + $0x8] sm:$0xf] %vm406_vm11, %v404_v33  ;;  %vm297_vm11 = vcmask 556032  }
  0xce   : > { %298 = vst.msk [vmem:[#allocation3 + $0x10] sm:$0xff] %vm297_vm11, %v2098_v0  ;;  %vm921_vm11 = vcmask 581048  }
  0xd1   : > { %v2279_v34 = vld [vmem:[#allocation2] sm:$0xff] }
  0xd2   : > { %428 = vrot.lane.b32.xlu0 %v2279_v34, %s2620_s22  ;;  %v2285_v35 = vcombine.high %v2279_v34, %v2279_v34  ;;  %v414_v38 = vcombine.low %v2279_v34, %v2279_v34 }
  0xd4   : > { %v2287_v36 = vld [vmem:[#allocation2 + $0x8] sm:$0xf] }
  0xd5   : > { %v1924_v37 = vpack.i.bf16 %v2287_v36, %v2285_v35  ;;  %v415_v39 = vcombine.low %v2287_v36, %v2287_v36 }
  0xd6   : > { %452 = vrot.lane.b32.xlu0 %v2279_v34, %s2618_s19 }
  0xd7   : > { %1925 = vrot.lane.b32.xlu1 %v1924_v37, %s2620_s22  ;;  %v1939_v41 = vpack.i.bf16 %v415_v39, %v2279_v34  ;;  %s2625_s22 = smov 91  }
  0xda   : > { %1930 = vrot.lane.b32.xlu0 %v1924_v37, %s2618_s19  ;;  %s2121_s19 = smov 108  }
  0xdb   : > { %416 = vrot.lane.b32.xlu1 %v414_v38, %s2117_s14 }
  0xde   : > { %1935 = vrot.lane.b32.xlu0 %v1924_v37, %s2119_s18 }
  0xdf   : > { %440 = vrot.lane.b32.xlu1 %v414_v38, %s2120_s15 }
  0xe2   : > { %1940 = vrot.lane.b32.xlu0 %v1939_v41, %s2117_s14 }
  0xe3   : > { %464 = vrot.lane.b32.xlu1 %v414_v38, %s2121_s19 }
  0xe6   : > { %1945 = vrot.lane.b32.xlu0 %v1939_v41, %s2120_s15 }
  0xe7   : > { %1950 = vrot.lane.b32.xlu1 %v1939_v41, %s2121_s19 }
  0xea   : > { %476 = vrot.lane.b32.xlu0 %v2279_v34, %s2119_s18 }
  0xeb   : > { %1955 = vrot.lane.b32.xlu1 %v1939_v41, %s2625_s22  ;;  %v677_v41 = vld [vmem:[#allocation4 + $0x18] sm:$0xff] }
  0xee   : > { %502 = vrot.lane.b32.xlu0 %v2285_v35, %s2623_s16 }
  0xef   : > { %488 = vrot.lane.b32.xlu1 %v414_v38, %s2625_s22  ;;  %s2640_s22 = smov 41  }
  0xf2   : > { %500 = vrot.lane.b32.xlu0 %v2279_v34, %s2623_s16 }
  0xf3   : > { %504 = vrot.lane.b32.xlu1 %v2287_v36, %s2623_s16  ;;  %s2643_s16 = smov 43  }
 0x144   : > { %v429_v42 = vpop.permute.xlu0 %428 }
 0x148   : > { %v2319_v43 = vpop.permute.xlu0 %452 }
 0x149   : > { %v1926_v44 = vpop.permute.xlu1 %1925 }
 0x14a   : > { %v1928_v49 = vunpack.i.h.bf16 %v1926_v44  ;;  %v1927_v50 = vunpack.i.l.bf16 %v1926_v44  ;;  %v674_v44 = vld [vmem:[#allocation4] sm:$0xff] }
 0x14c   : > { %v2321_v45 = vpop.permute.xlu0 %1930  ;;  %v436_v58 = vsel %vm434_vm13, %v1927_v50, %v1928_v49  ;;  %v435_v13 = vsel %vm434_vm13, %v429_v42, %v1927_v50 }
 0x14d   : > { %v417_v46 = vpop.permute.xlu1 %416  ;;  %v1933_v55 = vunpack.i.h.bf16 %v2321_v45  ;;  %v1932_v56 = vunpack.i.l.bf16 %v2321_v45 }
 0x14f   : > { %v460_v22 = vsel %vm458_vm15, %v1932_v56, %v1933_v55  ;;  %v459_v33 = vsel %vm458_vm15, %v2319_v43, %v1932_v56  ;;  %v676_v43 = vld [vmem:[#allocation4 + $0x10] sm:$0xff]  ;;  %v683_v56 = vld [vmem:[#allocation4 + $0x48] sm:$0xff] }
 0x150   : > { %v2323_v47 = vpop.permute.xlu0 %1935 }
 0x151   : > { %v441_v48 = vpop.permute.xlu1 %440  ;;  %v1938_v59 = vunpack.i.h.bf16 %v2323_v47  ;;  %v1937_v1 = vunpack.i.l.bf16 %v2323_v47  ;;  %v679_v47 = vld [vmem:[#allocation4 + $0x28] sm:$0xff] }
 0x153   : > { %v484_v23 = vsel %vm2630_vm1, %v1937_v1, %v1938_v59 }
 0x154   : > { %v1941_v51 = vpop.permute.xlu0 %1940 }
 0x155   : > { %v1943_v52 = vunpack.i.h.bf16 %v1941_v51  ;;  %v1942_v53 = vunpack.i.l.bf16 %v1941_v51  ;;  %v465_v54 = vpop.permute.xlu1 %464  ;;  %v1695_v51 = vpack.c.bf16 %v676_v43, %v674_v44 }
 0x157   : > { %v424_v63 = vsel %vm422_vm14, %v1942_v53, %v1943_v52  ;;  %v423_v4 = vsel %vm422_vm14, %v417_v46, %v1942_v53  ;;  %v512_v5 = vsel %vm509_vm2, %v2287_v36, %v1943_v52 }
 0x158   : > { %v1946_v57 = vpop.permute.xlu0 %1945  ;;  %v511_v11 = vsel %vm509_vm2, %v2285_v35, %v424_v63  ;;  %v510_v16 = vsel %vm509_vm2, %v2279_v34, %v423_v4  ;;  %v689_v63 = vld [vmem:[#allocation4 + $0x78] sm:$0xff]  ;;  %v688_v4 = vld [vmem:[#allocation4 + $0x70] sm:$0xff] }
 0x159   : > { %v1948_v60 = vunpack.i.h.bf16 %v1946_v57  ;;  %v1947_v61 = vunpack.i.l.bf16 %v1946_v57  ;;  %v1951_v62 = vpop.permute.xlu1 %1950  ;;  %v685_v57 = vld [vmem:[#allocation4 + $0x58] sm:$0xff] }
 0x15a   : > { %v1953_v2 = vunpack.i.h.bf16 %v1951_v62  ;;  %v1952_v3 = vunpack.i.l.bf16 %v1951_v62  ;;  %v687_v62 = vld [vmem:[#allocation4 + $0x68] sm:$0xff] }
 0x15b   : > { %v515_v6 = vsel %vm509_vm2, %v1928_v49, %v1948_v60  ;;  %v448_v7 = vsel %vm446_vm3, %v1947_v61, %v1948_v60  ;;  %v447_v8 = vsel %vm446_vm3, %v441_v48, %v1947_v61  ;;  %v681_v48 = vld [vmem:[#allocation4 + $0x38] sm:$0xff]  ;;  %v682_v60 = vld [vmem:[#allocation4 + $0x40] sm:$0xff]  ;;  %v684_v61 = vld [vmem:[#allocation4 + $0x50] sm:$0xff] }
 0x15c   : > { %v477_v9 = vpop.permute.xlu0 %476  ;;  %v1688_v10 = vpack.c.bf16 %v515_v6, %v512_v5  ;;  %v514_v12 = vsel %vm509_vm2, %v436_v58, %v448_v7  ;;  %v513_v17 = vsel %vm509_vm2, %v435_v13, %v447_v8  ;;  %v472_v18 = vsel %vm470_vm0, %v1952_v3, %v1953_v2  ;;  %v522_v49 = vld [vmem:[%s2601_s1] sm:$0xff]  ;;  %v691_v5 = vld [vmem:[#allocation4 + $0x88] sm:$0xff] }
 0x15d   : > { %v1956_v14 = vpop.permute.xlu1 %1955  ;;  %v1679_v15 = vpack.c.bf16 %v514_v12, %v511_v11  ;;  %v1681_v21 = vpack.c.bf16 %v513_v17, %v510_v16  ;;  %v471_v24 = vsel %vm470_vm0, %v465_v54, %v1952_v3  ;;  %v518_v26 = vsel %vm509_vm2, %v1933_v55, %v1953_v2  ;;  %v678_v54 = vld [vmem:[#allocation4 + $0x20] sm:$0xff]  ;;  %v680_v55 = vld [vmem:[#allocation4 + $0x30] sm:$0xff]  ;;  %v693_v6 = vld [vmem:[#allocation4 + $0x98] sm:$0xff] }
 0x15e   : > { %v1958_v19 = vunpack.i.h.bf16 %v1956_v14  ;;  %v1957_v20 = vunpack.i.l.bf16 %v1956_v14  ;;  %1689 = vmatpush3.bf16.msra.mxu1 %v1688_v10  ;;  %v517_v31 = vsel %vm509_vm2, %v460_v22, %v472_v18  ;;  %v483_v34 = vsel %vm2630_vm1, %v477_v9, %v1937_v1  ;;  %v686_v3 = vld [vmem:[#allocation4 + $0x60] sm:$0xff]  ;;  %v692_v10 = vld [vmem:[#allocation4 + $0x90] sm:$0xff]  ;;  %v695_v11 = vld [vmem:[#allocation4 + $0xa8] sm:$0xff] }
 0x15f   : > { %1680 = vmatprep.subr.bf16.mxu0 %v1679_v15  ;;  %1690 = vmatprep.subr.bf16.mxu1 %v2118_v40  ;;  %v516_v38 = vsel %vm509_vm2, %v459_v33, %v471_v24  ;;  %v675_v40 = vld [vmem:[#allocation4 + $0x8] sm:$0xff]  ;;  %v1697_v53 = vpack.c.bf16 %v681_v48, %v679_v47  ;;  %v1699_v58 = vpack.c.bf16 %v680_v55, %v678_v54  ;;  %v690_v9 = vld [vmem:[#allocation4 + $0x80] sm:$0xff]  ;;  %v697_v12 = vld [vmem:[#allocation4 + $0xb8] sm:$0xff]  ;;  %vm941_vm1 = vcmask 1048568  }
 0x160   : > { %v503_v25 = vpop.permute.xlu0 %502  ;;  %1682 = vmatpush1.bf16.msra.mxu0 %v1681_v21  ;;  %v521_v27 = vsel %vm509_vm2, %v1938_v59, %v1958_v19  ;;  %v496_v28 = vsel %vm2629_vm4, %v1957_v20, %v1958_v19  ;;  %v1693_v50 = vpack.c.bf16 %v677_v41, %v675_v40  ;;  %v1701_v59 = vpack.c.bf16 %v685_v57, %v683_v56  ;;  %v694_v15 = vld [vmem:[#allocation4 + $0xa0] sm:$0xff]  ;;  %v696_v16 = vld [vmem:[#allocation4 + $0xb0] sm:$0xff]  ;;  %v699_v17 = vld [vmem:[#allocation4 + $0xc8] sm:$0xff] }
 0x161   : > { %v489_v29 = vpop.permute.xlu1 %488  ;;  %v1691_v30 = vpack.c.bf16 %v521_v27, %v518_v26  ;;  %v520_v32 = vsel %vm509_vm2, %v484_v23, %v496_v28  ;;  %v1703_v1 = vpack.c.bf16 %v684_v61, %v682_v60  ;;  %v1705_v2 = vpack.c.bf16 %v689_v63, %v687_v62  ;;  %v701_v18 = vld [vmem:[#allocation4 + $0xd8] sm:$0xff]  ;;  %v698_v21 = vld [vmem:[#allocation4 + $0xc0] sm:$0xff]  ;;  %v700_v22 = vld [vmem:[#allocation4 + $0xd0] sm:$0xff] }
 0x162   : > { %v495_v35 = vsel %vm2629_vm4, %v489_v29, %v1957_v20  ;;  %v1683_v36 = vpack.c.bf16 %v520_v32, %v517_v31  ;;  %v1707_v7 = vpack.c.bf16 %v688_v4, %v686_v3  ;;  %v1709_v8 = vpack.c.bf16 %v693_v6, %v691_v5  ;;  %v703_v23 = vld [vmem:[#allocation4 + $0xe8] sm:$0xff]  ;;  %v705_v24 = vld [vmem:[#allocation4 + $0xf8] sm:$0xff]  ;;  %v702_v27 = vld [vmem:[#allocation4 + $0xe0] sm:$0xff] }
 0x163   : > { %v519_v37 = vsel %vm509_vm2, %v483_v34, %v495_v35  ;;  %1692 = vmatpush3.bf16.msra.mxu1 %v1691_v30  ;;  %v1711_v13 = vpack.c.bf16 %v692_v10, %v690_v9  ;;  %v1713_v14 = vpack.c.bf16 %v697_v12, %v695_v11  ;;  %v1715_v19 = vpack.c.bf16 %v696_v16, %v694_v15  ;;  %v704_v28 = vld [vmem:[#allocation4 + $0xf0] sm:$0xff]  ;;  %v707_v29 = vld [vmem:[#allocation4 + $0x108] sm:$0xff]  ;;  %v709_v30 = vld [vmem:[#allocation4 + $0x118] sm:$0xff] }
 0x164   : > { %1684 = vmatprep.subr.bf16.mxu0 %v1683_v36  ;;  %v1685_v39 = vpack.c.bf16 %v519_v37, %v516_v38  ;;  %1646 = vmatprep.subr.mxu1 %v2098_v0  ;;  %v501_v45 = vpop.permute.xlu0 %500  ;;  %v1717_v20 = vpack.c.bf16 %v701_v18, %v699_v17  ;;  %v1721_v26 = vpack.c.bf16 %v705_v24, %v703_v23  ;;  %v706_v33 = vld [vmem:[#allocation4 + $0x100] sm:$0xff]  ;;  %v708_v34 = vld [vmem:[#allocation4 + $0x110] sm:$0xff]  ;;  %v711_v35 = vld [vmem:[#allocation4 + $0x128] sm:$0xff]  ;;  %vm979_vm4 = vcmask 1048552  }
 0x165   : > { %v505_v42 = vpop.permute.xlu1 %504  ;;  %v507_v52 = vsel %vm2628_vm5, %v501_v45, %v503_v25  ;;  %v1723_v31 = vpack.c.bf16 %v704_v28, %v702_v27  ;;  %v1725_v32 = vpack.c.bf16 %v709_v30, %v707_v29  ;;  %v713_v36 = vld [vmem:[#allocation4 + $0x138] sm:$0xff]  ;;  %v1727_v37 = vpack.c.bf16 %v708_v34, %v706_v33  ;;  %v712_v40 = vld [vmem:[#allocation4 + $0x130] sm:$0xff]  ;;  %v715_v41 = vld [vmem:[#allocation4 + $0x148] sm:$0xff] }
 0x166   : > { %v508_v46 = vsel %vm2628_vm5, %v503_v25, %v505_v42  ;;  %1686 = vmatpush1.bf16.msra.mxu0 %v1685_v39  ;;  %v1719_v25 = vpack.c.bf16 %v700_v22, %v698_v21  ;;  %v1729_v38 = vpack.c.bf16 %v713_v36, %v711_v35  ;;  %v710_v39 = vld [vmem:[#allocation4 + $0x120] sm:$0xff]  ;;  %v719_v47 = vld [vmem:[#allocation4 + $0x168] sm:$0xff]  ;;  %v721_v48 = vld [vmem:[#allocation4 + $0x178] sm:$0xff]  ;;  %vm926_vm5 = vcmask 728648  }
 0x167   : > { %1557 = vmatprep.subr.msk.mxu0 %vm509_vm2, %v508_v46  ;;  %1647 = vmatpush3.msk.msra.mxu1 %vm509_vm2, %v505_v42  ;;  %v717_v42 = vld [vmem:[#allocation4 + $0x158] sm:$0xff]  ;;  %v1731_v44 = vpack.c.bf16 %v712_v40, %v710_v39  ;;  %v714_v45 = vld [vmem:[#allocation4 + $0x140] sm:$0xff]  ;;  %v716_v46 = vld [vmem:[#allocation4 + $0x150] sm:$0xff] }
 0x168   : > { %1649 = vmatmul.mubr.msk.f32.vlgmr.msra.gmra.mrb[0].mxu1 %vm523_vm6, %v522_v49  ;;  %v1733_v43 = vpack.c.bf16 %v717_v42, %v715_v41  ;;  %v725_v54 = vld [vmem:[#allocation4 + $0x198] sm:$0xff]  ;;  %v722_v57 = vld [vmem:[#allocation4 + $0x180] sm:$0xff]  ;;  %v739_v15 = vld [vmem:[#allocation4 + $0x208] sm:$0xff] }
 0x169   : > { %1160 = vmatprep.mubr.f32.mxu1 %v2098_v0  ;;  %v729_v60 = vld [vmem:[#allocation4 + $0x1b8] sm:$0xff]  ;;  %v726_v63 = vld [vmem:[#allocation4 + $0x1a0] sm:$0xff]  ;;  %v740_v21 = vld [vmem:[#allocation4 + $0x210] sm:$0xff] }
 0x16a   : > { %1558 = vmatpush1.msk.msra.mxu0 %vm509_vm2, %v507_v52  ;;  %v720_v52 = vld [vmem:[#allocation4 + $0x170] sm:$0xff]  ;;  %v733_v3 = vld [vmem:[#allocation4 + $0x1d8] sm:$0xff]  ;;  %v730_v6 = vld [vmem:[#allocation4 + $0x1c0] sm:$0xff]  ;;  %vm948_vm2 = vcmask 269448  }
 0x16b   : > { %1559 = vmatmul.mubr.msk.f32.vlgmr.msra.gmra.mrb[0].mxu0 %vm523_vm6, %v522_v49  ;;  %1694 = vmatprep.subr.bf16.mxu0 %v1693_v50  ;;  %v1735_v49 = vpack.c.bf16 %v716_v46, %v714_v45  ;;  %v1737_v50 = vpack.c.bf16 %v721_v48, %v719_v47  ;;  %v737_v9 = vld [vmem:[#allocation4 + $0x1f8] sm:$0xff]  ;;  %v734_v12 = vld [vmem:[#allocation4 + $0x1e0] sm:$0xff]  ;;  %v743_v23 = vld [vmem:[#allocation4 + $0x228] sm:$0xff]  ;;  %vm911_vm6 = vcmask 285848  }
 0x16c   : > { %1696 = vmatpush1.bf16.msra.mxu0 %v1695_v51  ;;  %v718_v51 = vld [vmem:[#allocation4 + $0x160] sm:$0xff]  ;;  %v741_v16 = vld [vmem:[#allocation4 + $0x218] sm:$0xff] }
 0x16d   : > { %1698 = vmatprep.subr.bf16.mxu0 %v1697_v53  ;;  %v723_v53 = vld [vmem:[#allocation4 + $0x188] sm:$0xff]  ;;  %v1739_v55 = vpack.c.bf16 %v720_v52, %v718_v51  ;;  %v1757_v17 = vpack.c.bf16 %v741_v16, %v739_v15  ;;  %v746_v18 = vld [vmem:[%s2602_s2] sm:$0xff] }
 0x16e   : > { %v1741_v56 = vpack.c.bf16 %v725_v54, %v723_v53  ;;  %v745_v24 = vld [vmem:[#allocation4 + $0x238] sm:$0x3f]  ;;  %v742_v30 = vld [vmem:[#allocation4 + $0x220] sm:$0xff] }
 0x16f   : > { %v1761_v29 = vpack.c.bf16 %v745_v24, %v743_v23 }
 0x170   : > { %1700 = vmatpush1.bf16.msra.mxu0 %v1699_v58  ;;  %v724_v58 = vld [vmem:[#allocation4 + $0x190] sm:$0xff] }
 0x171   : > { %1702 = vmatprep.subr.bf16.mxu0 %v1701_v59  ;;  %v727_v59 = vld [vmem:[#allocation4 + $0x1a8] sm:$0xff]  ;;  %v1743_v61 = vpack.c.bf16 %v724_v58, %v722_v57 }
 0x172   : > { %v1745_v62 = vpack.c.bf16 %v729_v60, %v727_v59  ;;  %v1282_v60 = vld [vmem:[%s2605_s5] sm:$0xff] }
 0x174   : > { %1704 = vmatpush1.bf16.msra.mxu0 %v1703_v1  ;;  %v728_v1 = vld [vmem:[#allocation4 + $0x1b0] sm:$0xff] }
 0x175   : > { %1706 = vmatprep.subr.bf16.mxu0 %v1705_v2  ;;  %v731_v2 = vld [vmem:[#allocation4 + $0x1c8] sm:$0xff]  ;;  %v1747_v4 = vpack.c.bf16 %v728_v1, %v726_v63 }
 0x176   : > { %v1749_v5 = vpack.c.bf16 %v733_v3, %v731_v2 }
 0x178   : > { %1708 = vmatpush1.bf16.msra.mxu0 %v1707_v7  ;;  %v732_v7 = vld [vmem:[#allocation4 + $0x1d0] sm:$0xff] }
 0x179   : > { %1710 = vmatprep.subr.bf16.mxu0 %v1709_v8  ;;  %v735_v8 = vld [vmem:[#allocation4 + $0x1e8] sm:$0xff]  ;;  %v1751_v10 = vpack.c.bf16 %v732_v7, %v730_v6 }
 0x17a   : > { %v1753_v11 = vpack.c.bf16 %v737_v9, %v735_v8 }
 0x17c   : > { %1712 = vmatpush1.bf16.msra.mxu0 %v1711_v13  ;;  %v736_v13 = vld [vmem:[#allocation4 + $0x1f0] sm:$0xff] }
 0x17d   : > { %1714 = vmatprep.subr.bf16.mxu0 %v1713_v14  ;;  %v1755_v14 = vpack.c.bf16 %v736_v13, %v734_v12 }
 0x180   : > { %1716 = vmatpush1.bf16.msra.mxu0 %v1715_v19  ;;  %v2125_v19 = vmov 0  }
 0x181   : > { %1718 = vmatprep.subr.bf16.mxu0 %v1717_v20  ;;  %1959 = vset.pattern.permute.xlu1 %v2125_v19  ;;  %v738_v20 = vld [vmem:[#allocation4 + $0x200] sm:$0xff] }
 0x182   : > { %1995 = vset.pattern.permute.xlu0 %v2125_v19  ;;  %749 = vperm.xlu1 %1959, %v746_v18   ;;  %v1759_v27 = vpack.c.bf16 %v740_v21, %v738_v20 }
 0x184   : > { %1720 = vmatpush1.bf16.msra.mxu0 %v1719_v25 }
 0x185   : > { %1722 = vmatprep.subr.bf16.mxu0 %v1721_v26 }
 0x188   : > { %1724 = vmatpush1.bf16.msra.mxu0 %v1723_v31  ;;  %v744_v31 = vld [vmem:[#allocation4 + $0x230] sm:$0x3f] }
 0x189   : > { %1726 = vmatprep.subr.bf16.mxu0 %v1725_v32  ;;  %v1764_v32 = vpack.c.bf16 %v744_v31, %v742_v30 }
 0x18c   : > { %1728 = vmatpush1.bf16.msra.mxu0 %v1727_v37 }
 0x18d   : > { %1730 = vmatprep.subr.bf16.mxu0 %v1729_v38 }
 0x190   : > { %1732 = vmatpush1.bf16.msra.mxu0 %v1731_v44 }
 0x191   : > { %1734 = vmatprep.subr.bf16.mxu0 %v1733_v43 }
 0x194   : > { %1736 = vmatpush1.bf16.msra.mxu0 %v1735_v49 }
 0x195   : > { %1738 = vmatprep.subr.bf16.mxu0 %v1737_v50 }
 0x198   : > { %1740 = vmatpush1.bf16.msra.mxu0 %v1739_v55 }
 0x199   : > { %1742 = vmatprep.subr.bf16.mxu0 %v1741_v56 }
 0x19c   : > { %1744 = vmatpush1.bf16.msra.mxu0 %v1743_v61 }
 0x19d   : > { %1746 = vmatprep.subr.bf16.mxu0 %v1745_v62 }
 0x1a0   : > { %1748 = vmatpush1.bf16.msra.mxu0 %v1747_v4 }
 0x1a1   : > { %1750 = vmatprep.subr.bf16.mxu0 %v1749_v5 }
 0x1a4   : > { %1752 = vmatpush1.bf16.msra.mxu0 %v1751_v10 }
 0x1a5   : > { %1754 = vmatprep.subr.bf16.mxu0 %v1753_v11 }
 0x1a8   : > { %1756 = vmatpush1.bf16.msra.mxu0 %v1755_v14 }
 0x1a9   : > { %1758 = vmatprep.subr.bf16.mxu0 %v1757_v17 }
 0x201   : > { %v750_v33 = vpop.permute.xlu1 %749 }
 0x23b   : > { %v670_v22 = vpop.f32.mrb[0].mxu1 }
 0x23c   : > { %v1650_v25 = vpop.f32.mrb[1].mxu1 }
 0x23e   : > { %v599_v26 = vpop.f32.mrb[0].mxu0 }
 0x23f   : > { %v601_v28 = vpop.f32.mrb[1].mxu0 }
 0x240   : > { %827 = vmatprep.mubr.f32.mxu0 %v601_v28 }
 0x241   : > { %828 = vmatmul.mubr.f32.vlgmr.msra.gmra.mrb[2].mxu0 %v599_v26 }
 0x242   : > { %1760 = vmatpush1.bf16.msra.mxu0 %v1759_v27  ;;  %898 = vmatprep.mubr.f32.mxu0 %v2098_v0 }
 0x243   : > { %1763 = vmatprep.subr.msk.bf16.mxu0 %vm1762_vm9, %v1761_v29 }
 0x246   : > { %1766 = vmatpush1.bf16.msk.msra.mxu0 %vm1762_vm9, %v1764_v32  ;;  %vm916_vm9 = vcmask 433448  }
 0x249   : > { %1564 = vmatmul.mubr.msk.f32.vlgmr.msra.gmra.mrb[2].mxu0 %vm752_vm10, %v670_v22  ;;  %vm959_vm10 = vcmask 564648  }
 0x31c   : > { %v900_v34 = vpop.f32.mrb[2].mxu0 }
 0x31d   : > { %v1837_v35 = vadd.f32 %v900_v34, %v750_v33  ;;  %v902_v36 = vpop.f32.mrb[3].mxu0 }
 0x31e   : > { %v1838_v38 = vadd.f32 %v902_v36, %v750_v33 }
 0x31f   : > { %v905_v37 = vmax.f32 %v1837_v35, 0.0 }
 0x320   : > { %v906_v39 = vmax.f32 %v1838_v38, 0.0 }
 0x321   : > { %945 = vrot.lane.b32.xlu1 %v905_v37, %s2107_s17  ;;  %938 = vrot.lane.b32.xlu0 %v905_v37, %s2104_s8  ;;  %s2638_s17 = smov 39   ;;  %s2639_s8 = smov 25  }
 0x325   : > { %928 = vrot.lane.b32.xlu1 %v905_v37, %s2103_s29  ;;  %908 = vrot.lane.b32.xlu0 %v905_v37, %s2100_s21  ;;  %s2641_s29 = smov 45   ;;  %s2642_s21 = smov 47  }
 0x329   : > { %951 = vrot.lane.b32.xlu1 %v906_v39, %s2105_s9  ;;  %913 = vrot.lane.b32.xlu0 %v905_v37, %s2102_s23  ;;  %s2644_s9 = smov 49   ;;  %s2645_s23 = smov 29  }
 0x32d   : > { %956 = vrot.lane.b32.xlu1 %v906_v39, %s2108_s13  ;;  %918 = vrot.lane.b32.xlu0 %v905_v37, %s2099_s20  ;;  %s2646_s20 = smov 126   ;;  %s2647_s13 = smov 109  }
 0x331   : > { %961 = vrot.lane.b32.xlu1 %v906_v39, %s2638_s17  ;;  %923 = vrot.lane.b32.xlu0 %v905_v37, %s2639_s8  ;;  %s2648_s17 = smov 91   ;;  %s2649_s8 = smov 90  }
 0x335   : > { %966 = vrot.lane.b32.xlu1 %v906_v39, %s2640_s22  ;;  %976 = vrot.lane.b32.xlu0 %v906_v39, %s2641_s29  ;;  %s2127_s22 = smov [#allocation7]  }
 0x339   : > { %983 = vrot.lane.b32.xlu1 %v906_v39, %s2642_s21  ;;  %971 = vrot.lane.b32.xlu0 %v906_v39, %s2643_s16  ;;  %s284_s21 = sand.u32 1, %s2085_s25  }
 0x33a   : > { %s1554_s16 = sshll.u32 %s284_s21, 4 }
 0x33d   : > { %988 = vrot.lane.b32.xlu1 %v906_v39, %s2644_s9  ;;  %933 = vrot.lane.b32.xlu0 %v905_v37, %s2645_s23  ;;  %s286_s9 = scalar_lea.vmem [#allocation7], %s1554_s16 }
 0x33e   : > { %s1474_s23 = sshll.u32 %s286_s9, 4  ;;  %s2557_s23 = int_to_ptr.vmem [resolvable:$true] %s1474_s23 }
 0x393   : > { %v946_v40 = vpop.permute.xlu1 %945  ;;  %v939_v41 = vpop.permute.xlu0 %938 }
 0x394   : > { %944 = vst.msk [vmem:[#allocation3 + $0x8] sm:$0xff] %vm943_vm12, %v939_v41  ;;  %vm931_vm12 = vcmask 876248  }
 0x395   : > { %949 = vst.msk [vmem:[#allocation3 + $0x8] sm:$0xff] %vm948_vm2, %v946_v40  ;;  %vm969_vm2 = vcmask 859848  }
 0x397   : > { %v929_v42 = vpop.permute.xlu1 %928  ;;  %v909_v44 = vpop.permute.xlu0 %908 }
 0x398   : > { %912 = vst.msk [vmem:[#allocation3] sm:$0xff] %vm911_vm6, %v909_v44  ;;  %vm981_vm6 = vcmask 105472  }
 0x39b   : > { %v952_v43 = vpop.permute.xlu1 %951  ;;  %v914_v45 = vpop.permute.xlu0 %913 }
 0x39c   : > { %955 = vst.msk [vmem:[#allocation3 + $0x8] sm:$0xff] %vm954_vm7, %v952_v43  ;;  %vm986_vm7 = vcmask 253048  }
 0x39d   : > { %917 = vst.msk [vmem:[#allocation3] sm:$0xff] %vm916_vm9, %v914_v45  ;;  %vm974_vm9 = vcmask 1007448  }
 0x39f   : > { %v957_v46 = vpop.permute.xlu1 %956  ;;  %v919_v47 = vpop.permute.xlu0 %918 }
 0x3a0   : > { %960 = vst.msk [vmem:[#allocation3 + $0x8] sm:$0xff] %vm959_vm10, %v957_v46  ;;  %vm991_vm10 = vcmask 400648  }
 0x3a1   : > { %922 = vst.msk [vmem:[#allocation3] sm:$0xff] %vm921_vm11, %v919_v47  ;;  %vm936_vm11 = vcmask 1023848  }
 0x3a3   : > { %v962_v48 = vpop.permute.xlu1 %961  ;;  %v924_v49 = vpop.permute.xlu0 %923 }
 0x3a4   : > { %965 = vst.msk [vmem:[#allocation3 + $0x8] sm:$0xff] %vm964_vm8, %v962_v48  ;;  %vm2656_vm8 = vmmov 1  }
 0x3a5   : > { %927 = vst.msk [vmem:[#allocation3] sm:$0xff] %vm926_vm5, %v924_v49  ;;  %vm1301_vm5 = vcmask 1042432  }
 0x3a6   : > { %932 = vst.msk [vmem:[#allocation3] sm:$0xff] %vm931_vm12, %v929_v42  ;;  %vm1832_vm12 = vmpackc.low %vm1301_vm5, %vm2656_vm8 }
 0x3a7   : > { %v967_v50 = vpop.permute.xlu1 %966  ;;  %v977_v51 = vpop.permute.xlu0 %976 }
 0x3a8   : > { %970 = vst.msk [vmem:[#allocation3 + $0x8] sm:$0xff] %vm969_vm2, %v967_v50  ;;  %vm1294_vm2 = vcmask 89088  }
 0x3a9   : > { %982 = vst.msk [vmem:[#allocation3 + $0x10] sm:$0xff] %vm981_vm6, %v977_v51  ;;  %vm1457_vm6 = vcmask 523264  }
 0x3ab   : > { %v984_v52 = vpop.permute.xlu1 %983  ;;  %v972_v53 = vpop.permute.xlu0 %971 }
 0x3ac   : > { %987 = vst.msk [vmem:[#allocation3 + $0x10] sm:$0xff] %vm986_vm7, %v984_v52 }
 0x3ad   : > { %975 = vst.msk [vmem:[#allocation3 + $0x8] sm:$0xff] %vm974_vm9, %v972_v53  ;;  %v1087_v53 = vld [vmem:[%s2604_s4] sm:$0xff] }
 0x3ae   : > { %980 = vst.msk [vmem:[#allocation3 + $0x8] sm:$0xff] %vm979_vm4, %v977_v51  ;;  %vm1089_vm4 = vcmask 588800  }
 0x3af   : > { %v989_v54 = vpop.permute.xlu1 %988  ;;  %v934_v55 = vpop.permute.xlu0 %933 }
 0x3b0   : > { %992 = vst.msk [vmem:[#allocation3 + $0x10] sm:$0xff] %vm991_vm10, %v989_v54 }
 0x3b1   : > { %937 = vst.msk [vmem:[#allocation3] sm:$0xff] %vm936_vm11, %v934_v55 }
 0x3b2   : > { %942 = vst.msk [vmem:[#allocation3] sm:$0xff] %vm941_vm1, %v939_v41 }
 0x3b5   : > { %v994_v58 = vld [vmem:[#allocation3 + $0x8] sm:$0xff] }
 0x3b7   : > { %v2396_v57 = vld [vmem:[#allocation3 + $0x10] sm:$0xff] }
 0x3b8   : > { %v1960_v59 = vpack.i.bf16 %v2396_v57, %v994_v58 }
 0x3b9   : > { %v993_v56 = vld [vmem:[#allocation3] sm:$0xff] }
 0x3ba   : > { %1010 = vrot.lane.b32.xlu0 %v993_v56, %s2646_s20  ;;  %999 = vrot.lane.b32.xlu1 %v993_v56, %s2117_s14 }
 0x3be   : > { %1032 = vrot.lane.b32.xlu0 %v993_v56, %s2647_s13  ;;  %1021 = vrot.lane.b32.xlu1 %v993_v56, %s2120_s15 }
 0x3c2   : > { %1054 = vrot.lane.b32.xlu0 %v993_v56, %s2119_s18  ;;  %1043 = vrot.lane.b32.xlu1 %v993_v56, %s2121_s19 }
 0x3c6   : > { %1961 = vrot.lane.b32.xlu0 %v1960_v59, %s2117_s14  ;;  %1971 = vrot.lane.b32.xlu1 %v1960_v59, %s2120_s15  ;;  %s2559_s14 = scalar_lea.sflag [#allocation6], %s284_s21  ;;  %s2031_s15 = sshll.u32 %s2127_s22, 4  ;;  %s2032_s15 = int_to_ptr.vmem [resolvable:$false] %s2031_s15 }
 0x3c7   : > { %p2034_p2 = scmp.lt.s32.totalorder %s2557_s23, %s2032_s15 }
 0x3ca   : > { %1966 = vrot.lane.b32.xlu0 %v1960_v59, %s2646_s20  ;;  %1981 = vrot.lane.b32.xlu1 %v1960_v59, %s2121_s19  ;;  %s1578_s20 = sshll.u32 %s2191_s28, 8  ;;  %s2027_s28 = scalar_lea.vmem %s2557_s23, 256 }
 0x3cb   : > { %p2028_p6 = scmp.ne.s32.totalorder %s2557_s23, %s2027_s28 }
 0x3cd   : > { %p2029_p10 = pnand %p2028_p6, %p2657_p9 }
 0x3ce   : > { %1976 = vrot.lane.b32.xlu0 %v1960_v59, %s2647_s13  ;;  %1991 = vrot.lane.b32.xlu1 %v1960_v59, %s2648_s17 }
 0x3cf   : > { %p2030_p12 = pneg %p2029_p10 }
 0x3d2   : > { %1986 = vrot.lane.b32.xlu0 %v1960_v59, %s2119_s18  ;;  %1065 = vrot.lane.b32.xlu1 %v993_v56, %s2648_s17  ;;  %v1264_v59 = vld [vmem:[%s2606_s6 + $0x80] sm:$0xff]  ;;  %s2033_s18 = scalar_lea.vmem %s2032_s15, 512 }
 0x3d3   : > { %p2035_p3 = scmp.lt.s32.totalorder %s2033_s18, %s2027_s28 }
 0x3d5   : > { %p2036_p4 = por %p2035_p3, %p2034_p2 }
 0x3d6   : > { %1078 = vrot.lane.b32.xlu0 %v994_v58, %s2649_s8  ;;  %1080 = vrot.lane.b32.xlu1 %v2396_v57, %s2649_s8 }
 0x3d7   : > { %p2037_p7 = pnand %p2036_p4, %p2030_p12 }
 0x3da   : > { %1076 = vrot.lane.b32.xlu0 %v993_v56, %s2649_s8  ;;  %1286 = vperm.xlu1 %1959, %v1282_v60   ;;  %v1248_v60 = vld [vmem:[%s2606_s6] sm:$0xff]  ;;  %s2555_s8 = scalar_lea.hbm %s2607_s7, %s1578_s20 }
 0x42c   : > { %v1011_v61 = vpop.permute.xlu0 %1010  ;;  %v1000_v62 = vpop.permute.xlu1 %999 }
 0x430   : > { %v1033_v63 = vpop.permute.xlu0 %1032  ;;  %v1022_v1 = vpop.permute.xlu1 %1021 }
 0x434   : > { %v1055_v2 = vpop.permute.xlu0 %1054  ;;  %v1044_v3 = vpop.permute.xlu1 %1043 }
 0x438   : > { %v1962_v4 = vpop.permute.xlu0 %1961  ;;  %v1972_v5 = vpop.permute.xlu1 %1971 }
 0x439   : > { %v1964_v6 = vunpack.i.h.bf16 %v1962_v4  ;;  %v1963_v7 = vunpack.i.l.bf16 %v1962_v4  ;;  %v1974_v9 = vunpack.i.h.bf16 %v1972_v5  ;;  %v1973_v10 = vunpack.i.l.bf16 %v1972_v5  ;;  %v1250_v4 = vld [vmem:[%s2606_s6 + $0x10] sm:$0xff]  ;;  %v1251_v5 = vld [vmem:[%s2606_s6 + $0x18] sm:$0xff] }
 0x43b   : > { %v1005_v8 = vsel %vm422_vm14, %v1000_v62, %v1963_v7  ;;  %v1006_v11 = vsel %vm422_vm14, %v1963_v7, %v1964_v6  ;;  %v1027_v20 = vsel %vm446_vm3, %v1022_v1, %v1973_v10  ;;  %v1028_v23 = vsel %vm446_vm3, %v1973_v10, %v1974_v9  ;;  %v1266_v62 = vld [vmem:[%s2606_s6 + $0x90] sm:$0xff]  ;;  %v1269_v7 = vld [vmem:[%s2606_s6 + $0xa8] sm:$0xff]  ;;  %v1252_v10 = vld [vmem:[%s2606_s6 + $0x20] sm:$0xff] }
 0x43c   : > { %v1769_v12 = vpack.c.bf16 %v1005_v8, %v993_v56  ;;  %v1967_v13 = vpop.permute.xlu0 %1966  ;;  %v1982_v14 = vpop.permute.xlu1 %1981  ;;  %v1767_v15 = vpack.c.bf16 %v1006_v11, %v994_v58  ;;  %vm2651_vm14 = vcmask 744448   ;;  %v1783_v54 = vpack.c.bf16 %v1964_v6, %v2396_v57  ;;  %v1088_v56 = vld [vmem:[%s2604_s4 + $0x8] sm:$0xff]  ;;  %v1268_v6 = vld [vmem:[%s2606_s6 + $0xa0] sm:$0xff] }
 0x43d   : > { %v1969_v16 = vunpack.i.h.bf16 %v1967_v13  ;;  %v1968_v17 = vunpack.i.l.bf16 %v1967_v13  ;;  %v1984_v18 = vunpack.i.h.bf16 %v1982_v14  ;;  %v1983_v19 = vunpack.i.l.bf16 %v1982_v14  ;;  %vm2653_vm1 = vmmov %vm2651_vm14  ;;  %v1253_v11 = vld [vmem:[%s2606_s6 + $0x28] sm:$0xff]  ;;  %v1271_v13 = vld [vmem:[%s2606_s6 + $0xb8] sm:$0xff] }
 0x43e   : > { %1768 = vmatprep.subr.bf16.mxu1 %v1767_v15  ;;  %v1805_v8 = vpack.c.bf16 %v1251_v5, %v1250_v4  ;;  %v1809_v14 = vpack.c.bf16 %v1253_v11, %v1252_v10 }
 0x43f   : > { %v1016_v21 = vsel %vm434_vm13, %v1011_v61, %v1968_v17  ;;  %1770 = vmatpush1.bf16.msra.mxu1 %v1769_v12  ;;  %v1017_v22 = vsel %vm434_vm13, %v1968_v17, %v1969_v16  ;;  %v1049_v30 = vsel %vm470_vm0, %v1044_v3, %v1983_v19  ;;  %v1050_v31 = vsel %vm470_vm0, %v1983_v19, %v1984_v18  ;;  %v1249_v61 = vld [vmem:[%s2606_s6 + $0x8] sm:$0xff]  ;;  %v1270_v12 = vld [vmem:[%s2606_s6 + $0xb0] sm:$0xff]  ;;  %v1255_v17 = vld [vmem:[%s2606_s6 + $0x38] sm:$0xff] }
 0x440   : > { %v1773_v24 = vpack.c.bf16 %v1027_v20, %v1016_v21  ;;  %v1977_v25 = vpop.permute.xlu0 %1976  ;;  %v1992_v26 = vpop.permute.xlu1 %1991  ;;  %v1771_v27 = vpack.c.bf16 %v1028_v23, %v1017_v22  ;;  %vm2650_vm13 = vcmask 752640   ;;  %v1787_v55 = vpack.c.bf16 %v1974_v9, %v1969_v16  ;;  %v1254_v16 = vld [vmem:[%s2606_s6 + $0x30] sm:$0xff]  ;;  %v1273_v19 = vld [vmem:[%s2606_s6 + $0xc8] sm:$0xff]  ;;  %v1256_v22 = vld [vmem:[%s2606_s6 + $0x40] sm:$0xff] }
 0x441   : > { %v1979_v28 = vunpack.i.h.bf16 %v1977_v25  ;;  %v1978_v29 = vunpack.i.l.bf16 %v1977_v25  ;;  %v1994_v33 = vunpack.i.h.bf16 %v1992_v26  ;;  %v1993_v34 = vunpack.i.l.bf16 %v1992_v26  ;;  %vm2652_vm0 = vmmov %vm2650_vm13  ;;  %v1257_v23 = vld [vmem:[%s2606_s6 + $0x48] sm:$0xff]  ;;  %v1275_v25 = vld [vmem:[%s2606_s6 + $0xd8] sm:$0xff] }
 0x442   : > { %1772 = vmatprep.subr.bf16.mxu1 %v1771_v27  ;;  %v1807_v9 = vpack.c.bf16 %v1269_v7, %v1268_v6  ;;  %v1811_v15 = vpack.c.bf16 %v1271_v13, %v1270_v12  ;;  %v1813_v20 = vpack.c.bf16 %v1255_v17, %v1254_v16  ;;  %v1817_v26 = vpack.c.bf16 %v1257_v23, %v1256_v22 }
 0x443   : > { %v1038_v32 = vsel %vm458_vm15, %v1033_v63, %v1978_v29  ;;  %1774 = vmatpush1.bf16.msra.mxu1 %v1773_v24  ;;  %v1039_v35 = vsel %vm458_vm15, %v1978_v29, %v1979_v28  ;;  %v1072_v45 = vsel %vm2653_vm1, %v1993_v34, %v1994_v33  ;;  %vm2654_vm15 = vcmask 736256   ;;  %v1267_v63 = vld [vmem:[%s2606_s6 + $0x98] sm:$0xff]  ;;  %v1274_v24 = vld [vmem:[%s2606_s6 + $0xd0] sm:$0xff] }
 0x444   : > { %v1777_v36 = vpack.c.bf16 %v1049_v30, %v1038_v32  ;;  %v1987_v37 = vpop.permute.xlu0 %1986  ;;  %v1066_v38 = vpop.permute.xlu1 %1065  ;;  %v1775_v39 = vpack.c.bf16 %v1050_v31, %v1039_v35  ;;  %vm2655_vm3 = vmmov %vm2654_vm15  ;;  %v1791_v58 = vpack.c.bf16 %v1984_v18, %v1979_v28  ;;  %v1803_v3 = vpack.c.bf16 %v1267_v63, %v1266_v62  ;;  %v1272_v18 = vld [vmem:[%s2606_s6 + $0xc0] sm:$0xff]  ;;  %v1258_v28 = vld [vmem:[%s2606_s6 + $0x50] sm:$0xff] }
 0x445   : > { %v1989_v40 = vunpack.i.h.bf16 %v1987_v37  ;;  %v1988_v41 = vunpack.i.l.bf16 %v1987_v37  ;;  %v1071_v44 = vsel %vm2651_vm14, %v1066_v38, %v1993_v34  ;;  %v1815_v21 = vpack.c.bf16 %v1273_v19, %v1272_v18  ;;  %v1259_v29 = vld [vmem:[%s2606_s6 + $0x58] sm:$0xff]  ;;  %v1276_v30 = vld [vmem:[%s2606_s6 + $0xe0] sm:$0xff]  ;;  %v1277_v31 = vld [vmem:[%s2606_s6 + $0xe8] sm:$0xff] }
 0x446   : > { %1776 = vmatprep.subr.bf16.mxu1 %v1775_v39  ;;  %v1819_v27 = vpack.c.bf16 %v1275_v25, %v1274_v24  ;;  %v1821_v32 = vpack.c.bf16 %v1259_v29, %v1258_v28  ;;  %v1260_v34 = vld [vmem:[%s2606_s6 + $0x60] sm:$0xff]  ;;  %v1261_v35 = vld [vmem:[%s2606_s6 + $0x68] sm:$0xff]  ;;  %v1279_v37 = vld [vmem:[%s2606_s6 + $0xf8] sm:$0xff] }
 0x447   : > { %v1060_v42 = vsel %vm2650_vm13, %v1055_v2, %v1988_v41  ;;  %1778 = vmatpush1.bf16.msra.mxu1 %v1777_v36  ;;  %v1061_v43 = vsel %vm2652_vm0, %v1988_v41, %v1989_v40  ;;  %v1795_v57 = vpack.c.bf16 %v1994_v33, %v1989_v40  ;;  %v1801_v2 = vpack.c.bf16 %v1249_v61, %v1248_v60  ;;  %v1278_v36 = vld [vmem:[%s2606_s6 + $0xf0] sm:$0xff]  ;;  %v1263_v41 = vld [vmem:[%s2606_s6 + $0x78] sm:$0xff] }
 0x448   : > { %v1781_v46 = vpack.c.bf16 %v1071_v44, %v1060_v42  ;;  %v1079_v47 = vpop.permute.xlu0 %1078  ;;  %v1081_v48 = vpop.permute.xlu1 %1080  ;;  %v1779_v49 = vpack.c.bf16 %v1072_v45, %v1061_v43  ;;  %v1823_v33 = vpack.c.bf16 %v1277_v31, %v1276_v30  ;;  %v1825_v38 = vpack.c.bf16 %v1261_v35, %v1260_v34  ;;  %v1262_v40 = vld [vmem:[%s2606_s6 + $0x70] sm:$0xff]  ;;  %v1280_v44 = vld [vmem:[%s2606_s6 + $0x100] sm:$0xff]  ;;  %v1281_v43 = vld [vmem:[%s2606_s6 + $0x108] sm:$0x7] }
 0x449   : > { %v1083_v50 = vsel %vm2654_vm15, %v1079_v47, %v1081_v48  ;;  %v1827_v39 = vpack.c.bf16 %v1279_v37, %v1278_v36  ;;  %v1829_v42 = vpack.c.bf16 %v1263_v41, %v1262_v40  ;;  %v1831_v45 = vpack.c.bf16 %v1281_v43, %v1280_v44 }
 0x44a   : > { %1780 = vmatprep.subr.bf16.mxu1 %v1779_v49 }
 0x44b   : > { %1782 = vmatpush1.bf16.msra.mxu1 %v1781_v46  ;;  %1833 = vmatprep.subr.msk.bf16.mxu0 %vm1832_vm12, %v1831_v45  ;;  %v1283_v46 = vld [vmem:[%s2605_s5 + $0x8] sm:$0xff] }
 0x44c   : > { %v1077_v51 = vpop.permute.xlu0 %1076  ;;  %1112 = vmatprep.subr.mxu1 %v1083_v50  ;;  %1836 = vmatpush3.bf16.msk.msra.mxu0 %vm1832_vm12, %v1831_v45 }
 0x44d   : > { %v1082_v52 = vsel %vm2655_vm3, %v1077_v51, %v1079_v47  ;;  %1291 = vperm.xlu0 %1995, %v1283_v46  }
 0x44f   : > { %1113 = vmatpush1.msra.mxu1 %v1082_v52 }
 0x450   : > { %1565 = vmatmul.mubr.msk.f32.vlgmr.msra.gmra.mrb[2].mxu1 %vm1089_vm4, %v1087_v53  ;;  %1784 = vmatprep.subr.bf16.mxu1 %v1783_v54 }
 0x451   : > { %1786 = vmatpush3.bf16.msra.mxu1 %v1783_v54  ;;  %1166 = vmatprep.mubr.f32.mxu1 %v2098_v0  ;;  %v1265_v0 = vld [vmem:[%s2606_s6 + $0x88] sm:$0xff] }
 0x452   : > { %1788 = vmatprep.subr.bf16.mxu1 %v1787_v55  ;;  %v1799_v1 = vpack.c.bf16 %v1265_v0, %v1264_v59 }
 0x454   : > { %1566 = vmatmul.mubr.msk.f32.gmra.mrb[4].mxu1 %vm1089_vm4, %v1088_v56 }
 0x455   : > { %1790 = vmatpush3.bf16.msra.mxu1 %v1787_v55  ;;  %1669 = vmatprep.mubr.msk.f32.mxu1 %vm1089_vm4, %v1087_v53 }
 0x456   : > { %1792 = vmatprep.subr.bf16.mxu1 %v1791_v58 }
 0x459   : > { %1794 = vmatpush3.bf16.msra.mxu1 %v1791_v58  ;;  %v1287_v0 = vpop.permute.xlu1 %1286 }
 0x45a   : > { %1796 = vmatprep.subr.bf16.mxu1 %v1795_v57 }
 0x45d   : > { %1798 = vmatpush3.bf16.msra.mxu1 %v1795_v57 }
 0x45e   : > { %1667 = vmatprep.subr.mxu1 %v1081_v48 }
 0x461   : > { %1668 = vmatpush3.msra.mxu1 %v1081_v48 }
 0x462   : > { %1670 = vmatmul.mubr.msk.f32.vlgmr.msra.gmra.mrb[6].mxu1 %vm1089_vm4, %v1088_v56  ;;  %1800 = vmatprep.subr.bf16.mxu1 %v1799_v1 }
 0x463   : > { %1802 = vmatpush3.bf16.msra.mxu1 %v1801_v2 }
 0x464   : > { %1804 = vmatprep.subr.bf16.mxu1 %v1803_v3 }
 0x467   : > { %1806 = vmatpush3.bf16.msra.mxu1 %v1805_v8 }
 0x468   : > { %1808 = vmatprep.subr.bf16.mxu1 %v1807_v9 }
 0x46b   : > { %1810 = vmatpush3.bf16.msra.mxu1 %v1809_v14 }
 0x46c   : > { %1812 = vmatprep.subr.bf16.mxu1 %v1811_v15 }
 0x46f   : > { %1814 = vmatpush3.bf16.msra.mxu1 %v1813_v20 }
 0x470   : > { %1816 = vmatprep.subr.bf16.mxu1 %v1815_v21 }
 0x473   : > { %1818 = vmatpush3.bf16.msra.mxu1 %v1817_v26 }
 0x474   : > { %1820 = vmatprep.subr.bf16.mxu1 %v1819_v27 }
 0x477   : > { %1822 = vmatpush3.bf16.msra.mxu1 %v1821_v32 }
 0x478   : > { %1824 = vmatprep.subr.bf16.mxu1 %v1823_v33 }
 0x47b   : > { %1826 = vmatpush3.bf16.msra.mxu1 %v1825_v38 }
 0x47c   : > { %1828 = vmatprep.subr.bf16.mxu1 %v1827_v39 }
 0x47f   : > { %1830 = vmatpush3.bf16.msra.mxu1 %v1829_v42 }
 0x4cc   : > { %v1292_v59 = vpop.permute.xlu0 %1291 }
 0x523   : > { %v1162_v47 = vpop.f32.mrb[2].mxu1 }
 0x524   : > { %v1164_v48 = vpop.f32.mrb[3].mxu1 }
 0x525   : > { %1369 = vmatprep.mubr.f32.mxu1 %v1164_v48 }
 0x526   : > { %1370 = vmatmul.mubr.f32.vlgmr.msra.gmra.mrb[8].mxu1 %v1162_v47 }
 0x527   : > { %v1168_v49 = vpop.f32.mrb[4].mxu1 }
 0x528   : > { %v1170_v50 = vpop.f32.mrb[5].mxu1 }
 0x529   : > { %1374 = vmatprep.mubr.f32.mxu1 %v1170_v50 }
 0x52a   : > { %1375 = vmatmul.mubr.f32.gmra.mrb[10].mxu1 %v1168_v49 }
 0x535   : > { %v1671_v51 = vpop.f32.mrb[6].mxu1 }
 0x536   : > { %v1239_v52 = vpop.f32.mrb[7].mxu1 }
 0x537   : > { %1676 = vmatprep.mubr.msk.f32.mxu0 %vm1294_vm2, %v1239_v52 }
 0x538   : > { %1677 = vmatmul.mubr.msk.f32.vlgmr.msra.gmra.mrb[4].mxu0 %vm1294_vm2, %v1671_v51 }
 0x5f9   : > { %v1628_v53 = vpop.f32.mrb[8].mxu1 }
 0x5fa   : > { %v1629_v54 = vpop.f32.mrb[9].mxu1 }
 0x5fb   : > { %v1630_v55 = vadd.f32 %v1629_v54, %v1628_v53 }
 0x5fd   : > { %v1631_v56 = vpop.f32.mrb[10].mxu1  ;;  %v1372_v62 = vadd.f32 %v1630_v55, %v1287_v0 }
 0x5fe   : > { %v1632_v58 = vpop.f32.mrb[11].mxu1 }
 0x5ff   : > { %v1633_v57 = vadd.f32 %v1632_v58, %v1631_v56 }
 0x601   : > { %v1377_v60 = vadd.f32 %v1633_v57, %v1292_v59 }
 0x60b   : > { %v1678_v61 = vpop.f32.mrb[4].mxu0 }
 0x60c   : > { %v1452_v63 = vadd.f32 %v1678_v61, %v1377_v60  ;;  %v1446_v1 = vpop.f32.mrb[5].mxu0 }
 0x60d   : > { %v1447_v2 = vadd.f32 %v1446_v1, %v1372_v62 }
 0x60e   : > { %v1456_v3 = vmax.f32 %v1452_v63, 0.0 }
 0x60f   : > { %v1455_v4 = vmax.f32 %v1447_v2, 0.0 }
 0x610   : > { %1459 = vst.msk [vmem:[%s286_s9 + $0x8] sm:$0xff] %vm1457_vm6, %v1456_v3 }
 0x611   : > { %1458 = vst.msk [vmem:[%s286_s9] sm:$0xff] %vm1457_vm6, %v1455_v4 }
 0x612   : > { %2040 = shalt.err (!%p2037_p7)
}
 0x613   : > { %s2041_s19 = scalar_lea.hbm %s2555_s8, 256  ;;  %s2045_s16 = scalar_lea.hbm %s2607_s7, 512 }
 0x614   : > { %p2042_p8 = scmp.ne.s32.totalorder %s2555_s8, %s2041_s19  ;;  %p2046_p1 = scmp.lt.u32.totalorder %s2555_s8, %s2607_s7 }
 0x615   : > { %p2047_p0 = scmp.lt.u32.totalorder %s2045_s16, %s2041_s19  ;;  %p2049_p6 = scmp.lt.u32.totalorder %s2041_s19, %s2555_s8 }
 0x616   : > { %p2043_p11 = pnand %p2042_p8, %p2657_p9 }
 0x617   : > { %p2048_p5 = por %p2047_p0, %p2046_p1 }
 0x618   : > { %p2044_p13 = pneg %p2043_p11 }
 0x619   : > { %p2050_p10 = por %p2049_p6, %p2048_p5 }
 0x61b   : > { %p2051_p12 = pnand %p2050_p10, %p2044_p13 }
 0x61d   : > { %2054 = shalt.err (!%p2051_p12)
}
 0x61e   : > { %s2128_s13 = smov 128   ;;  %s2129_s17 = smov 8  }
 0x61f   : > { %1845 = dma.vmem_to_hbm [thread:$0]  (%p2657_p9), %s2557_s23, 256, %s2555_s8, %s2559_s14, %s2128_s13, %s2128_s13, %s2129_s17  }
 0x620 PF: > { %p1857_p2 = scmp.ge.s32.totalorder %s2093_s27, 2  ;;  %s1489_s28 = sand.u32 1, %s2081_s24  }
 0x621   : > { %p2658_p3 = scmp.ne.s32.totalorder %s2632_s12, 0  ;;  %s1490_s22 = scalar_lea.sflag [#allocation6], %s1489_s28 }
 0x623   : > { %p1852_p4 = pnand %p1857_p2, %p2658_p3 }
 0x625   : > { %2076 = dma.done.wait (!%p1852_p4), %s1490_s22, 256  }
 0x626   : > { %2078 = vsyncadd (!%p1852_p4), %s1490_s22, 4294967040  ;;  %p18_p7 = scmp.ge.s32.totalorder %s2195_s30, 4   ;;  %s2659_s24 = smov %s2085_s25 }
 0x627   : > { %s2660_s25 = smov %s2089_s26  ;;  %s2661_s26 = smov %s2206_s10 }
 0x628   : > { %s2662_s27 = smov %s2195_s30  ;;  %20 = sbr.rel (!%p18_p7) target bundleno = 4 (0x4), region = 88 }
 0x62f   :  { %1495 = vsyncpa [#allocation5], 1 }
 0x630   :  { %1497 = vsyncpa [#allocation5 + $0x1], 1 }
 0x631   :  { %1498 = vsyncpa [#allocation6], 1 }
 0x632   :  { %1500 = vsyncpa [#allocation6 + $0x1], 1 }

</bundles_post_ra>
